<compile_context>
chip_gen: v7x
topology: tpu7x:2x2x1
jax: 0.10.0
libtpu: 0.0.40
codegen_flags: <defaults>
</compile_context>

<pallas_src>
import jax
import jax.numpy as jnp
from jax.experimental import pallas as pl
from jax.experimental.pallas import tpu as pltpu

H1 = 1024      # layer-1 width
H2 = 512       # layer-2 width
LANE = 128     # TPU lane width
SUB = 16       # sublane granule used for bf16 row tiles (bf16 native tile is (16, 128))


def _round_up(n, m):
    return ((n + m - 1) // m) * m


def _discriminator_kernel(x_ref, w1_ref, w2_ref, b2_ref, w3_ref, b3_ref, out_ref):
    """One batch tile of the fused MLP: (Linear+LeakyReLU) x2, Linear(512->1), Sigmoid.

    x_ref : (TB, K_pad)   bf16  (zero-padded features + constant-1 bias column)
    w1_ref: (K_pad, 1024) bf16  (b1 folded into the bias row; VMEM resident)
    w2_ref: (1024, 512)   bf16  (VMEM resident)
    b2_ref: (1, 512)      f32
    w3_ref: (1, 512)      f32   (final layer as a row -> VPU reduce)
    b3_ref: (1, 1)        f32
    """
    # Layer 1: MXU matmul, bf16 operands, f32 accumulation. Bias is folded into W1
    # (x carries a constant-1 column), so no broadcast-add here.
    h1 = jnp.dot(x_ref[...], w1_ref[...], preferred_element_type=jnp.float32)
    # Epilogue in bf16 (cast once, then 2-op LeakyReLU over half as many vregs);
    # layer 2 needs bf16 operands anyway.
    h1 = h1.astype(jnp.bfloat16)
    h1 = jnp.maximum(h1, 0.2 * h1)                            # LeakyReLU(0.2)
    # TODO(synk): nn.Dropout(0.4) is training-mode only; eval mode == identity here.

    # Layer 2: MXU matmul, bf16 operands, f32 accumulation; f32 epilogue.
    h2 = jnp.dot(h1, w2_ref[...], preferred_element_type=jnp.float32) + b2_ref[...]
    h2 = jnp.maximum(h2, 0.2 * h2)                            # LeakyReLU(0.2)

    # Layer 3: N=1 output column -> VPU multiply + lane reduction instead of a wasted
    # MXU pass; sigmoid via EUP exp + approximate reciprocal.
    logits = jnp.sum(h2 * w3_ref[...], axis=-1, keepdims=True) + b3_ref[...]
    out_ref[...] = pl.reciprocal(1.0 + jnp.exp(-logits), approx=True)


def init_params(coord_size, key):
    """Deterministic PyTorch-style (uniform +/- 1/sqrt(fan_in)) init, f32.

    Weights are stored transposed vs. PyTorch: W has shape (in_features, out_features)
    so the forward pass computes y = x @ W + b.
    """
    in_dim = 1 + coord_size
    dims = [(in_dim, H1), (H1, H2), (H2, 1)]
    params = []
    for (fan_in, fan_out) in dims:
        key, kw, kb = jax.random.split(key, 3)
        bound = 1.0 / jnp.sqrt(jnp.float32(fan_in))
        w = jax.random.uniform(kw, (fan_in, fan_out), jnp.float32, -bound, bound)
        b = jax.random.uniform(kb, (1, fan_out), jnp.float32, -bound, bound)
        params.extend([w, b])
    return tuple(params)


def prepare_params(params):
    """One-time host-side prep:
    * pad W1's input dim to a lane multiple with room for a bias row,
    * fold b1 into W1 as that bias row (paired with a constant-1 column in x),
    * cast the two large weight matrices to bf16,
    * reshape W3 to a (1, 512) row and b2/b3 to row vectors.
    """
    w1, b1, w2, b2, w3, b3 = params
    in_dim = w1.shape[0]
    k_pad = _round_up(in_dim + 1, LANE)           # +1 guarantees a spare bias column
    w1p = jnp.zeros((k_pad, H1), jnp.float32)
    w1p = w1p.at[:in_dim, :].set(w1)
    w1p = w1p.at[in_dim, :].set(b1.reshape(H1))   # bias row <-> ones column in x
    return (w1p.astype(jnp.bfloat16),
            w2.astype(jnp.bfloat16),
            b2.astype(jnp.float32).reshape(1, H2),
            w3.astype(jnp.float32).reshape(1, H2),
            b3.astype(jnp.float32).reshape(1, 1))


def _build_input(coords, labels, k_pad):
    """[coords | labels | 1.0 | zero pad] -> (B, k_pad) bf16, lane dense.

    Shared by the kernel wrapper and the pure-JAX reference so both see identical
    (bf16-rounded, bias-column) inputs.
    """
    B = coords.shape[0]
    feats = jnp.concatenate(
        [coords.reshape(B, -1).astype(jnp.float32),
         labels.reshape(B, -1).astype(jnp.float32),
         jnp.ones((B, 1), jnp.float32)],            # constant-1 column for folded b1
        axis=-1)
    feats = jnp.pad(feats, ((0, 0), (0, k_pad - feats.shape[1])))
    return feats.astype(jnp.bfloat16)


def discriminator_forward(coords, labels, prepared_params, *, tile_b=1024):
    """coords: (B, coord_size) f32, labels: (B, 1) f32 -> (B, 1) f32 in (0, 1)."""
    w1p, w2, b2, w3_row, b3 = prepared_params
    k_pad = w1p.shape[0]
    B = coords.shape[0]

    # Batch tiling: bf16-friendly sublane-aligned row tiles; keep >= 2 grid steps when
    # the batch allows it so v7x's two TensorCores both get work (parallel semantics).
    b_round = _round_up(B, SUB)
    tb = max(SUB, min(tile_b, b_round))
    if b_round >= 2 * SUB:
        tb = min(tb, _round_up(-(-b_round // 2), SUB))
    b_pad = _round_up(B, tb)

    # Lane-dense bf16 input (halves the streaming DMA vs f32); pad ragged rows.
    x = _build_input(coords, labels, k_pad)
    if b_pad != B:
        x = jnp.pad(x, ((0, b_pad - B), (0, 0)))

    out = pl.pallas_call(
        _discriminator_kernel,
        out_shape=jax.ShapeDtypeStruct((b_pad, 1), jnp.float32),
        grid=(b_pad // tb,),
        in_specs=[
            pl.BlockSpec((tb, k_pad), lambda i: (i, 0)),   # x row tile (pipelined)
            pl.BlockSpec((k_pad, H1), lambda i: (0, 0)),   # W1 (+b1 row), VMEM resident
            pl.BlockSpec((H1, H2),    lambda i: (0, 0)),   # W2, VMEM resident
            pl.BlockSpec((1, H2),     lambda i: (0, 0)),   # b2
            pl.BlockSpec((1, H2),     lambda i: (0, 0)),   # W3 as a row
            pl.BlockSpec((1, 1),      lambda i: (0, 0)),   # b3
        ],
        out_specs=pl.BlockSpec((tb, 1), lambda i: (i, 0)),
        compiler_params=pltpu.CompilerParams(
            dimension_semantics=("parallel",),
            vmem_limit_bytes=48 * 1024 * 1024,   # headroom for tile_b up to ~2048; < v7x 64 MiB physical
        ),
    )(x, w1p, w2, b2, w3_row, b3)
    return out[:B]


def _reference_forward(coords, labels, prepared_params):
    """Pure-JAX reference matching the kernel's numerics (bf16 weights/inputs,
    folded bias, bf16 layer-1 epilogue, f32 accumulation)."""
    w1p, w2, b2, w3_row, b3 = prepared_params
    x = _build_input(coords, labels, w1p.shape[0])
    h1 = jnp.dot(x.astype(jnp.float32), w1p.astype(jnp.float32))
    h1 = h1.astype(jnp.bfloat16)
    h1 = jnp.maximum(h1, 0.2 * h1)
    h2 = jnp.dot(h1.astype(jnp.float32), w2.astype(jnp.float32)) + b2
    h2 = jnp.maximum(h2, 0.2 * h2)
    logits = jnp.sum(h2 * w3_row, axis=-1, keepdims=True) + b3
    return jax.nn.sigmoid(logits)


if __name__ == "__main__":
    coord_size = 15          # => model input dim = 1 + coord_size = 16
    batch = 34               # not a multiple of the 16-row granule: exercises ragged padding
                             # and yields a 2-step grid (multi-tile pipelining path)

    key = jax.random.PRNGKey(0)
    k_params, k_coords, k_labels = jax.random.split(key, 3)

    params = init_params(coord_size, k_params)
    prepared = prepare_params(params)
    coords = jax.random.normal(k_coords, (batch, coord_size), jnp.float32)
    labels = jax.random.normal(k_labels, (batch, 1), jnp.float32)

    fwd = jax.jit(discriminator_forward)
    out = jax.block_until_ready(fwd(coords, labels, prepared))

    ref = _reference_forward(coords, labels, prepared)
    assert out.shape == (batch, 1)
    assert bool(jnp.all(jnp.isfinite(out)))
    # Tolerance accounts for bf16 weights/activations (matched in the reference) plus
    # the EUP approximate reciprocal in the final sigmoid.
    assert jnp.allclose(out, ref, atol=5e-3, rtol=1e-3), "mismatch vs. reference"

    print("KERNEL_OK")
</pallas_src>

<mosaic_0001>
module attributes {stable_mosaic.version = 11 : i64} {
  func.func @_discriminator_kernel(%arg0: i32, %arg1: memref<32x128xbf16, #tpu.memory_space<vmem>>, %arg2: memref<128x1024xbf16, #tpu.memory_space<vmem>>, %arg3: memref<1024x512xbf16, #tpu.memory_space<vmem>>, %arg4: memref<1x512xf32, #tpu.memory_space<vmem>>, %arg5: memref<1x512xf32, #tpu.memory_space<vmem>>, %arg6: memref<1x1xf32, #tpu.memory_space<vmem>>, %arg7: memref<32x1xf32, #tpu.memory_space<vmem>>) attributes {dimension_semantics = [#tpu.dimension_semantics<parallel>], iteration_bounds = array<i64: 2>, scalar_prefetch = 0 : i64, scratch_operands = 0 : i64, tpu.core_type = #tpu.core_type<tc>, window_params = [{transform_indices = @transform_0, window_bounds = array<i64: 32, 128>}, {pipeline_mode = #tpu.pipeline_mode<synchronous>, transform_indices = @transform_1, window_bounds = array<i64: 128, 1024>}, {pipeline_mode = #tpu.pipeline_mode<synchronous>, transform_indices = @transform_2, window_bounds = array<i64: 1024, 512>}, {pipeline_mode = #tpu.pipeline_mode<synchronous>, transform_indices = @transform_3, window_bounds = array<i64: 1, 512>}, {pipeline_mode = #tpu.pipeline_mode<synchronous>, transform_indices = @transform_4, window_bounds = array<i64: 1, 512>}, {pipeline_mode = #tpu.pipeline_mode<synchronous>, transform_indices = @transform_5, window_bounds = array<i64: 1, 1>}, {transform_indices = @transform_6, window_bounds = array<i64: 32, 1>}]} {
    %c0 = arith.constant 0 : index
    %c0_0 = arith.constant 0 : index
    %0 = vector.load %arg1[%c0, %c0_0] : memref<32x128xbf16, #tpu.memory_space<vmem>>, vector<32x128xbf16>
    %c0_1 = arith.constant 0 : index
    %c0_2 = arith.constant 0 : index
    %1 = vector.load %arg2[%c0_1, %c0_2] : memref<128x1024xbf16, #tpu.memory_space<vmem>>, vector<128x1024xbf16>
    %cst = arith.constant dense<0.000000e+00> : vector<32x1024xf32>
    %2 = tpu.matmul %0, %1, %cst {dimension_numbers = #tpu.dot_dimension_numbers<[1], [0], [0], [1], [0, 0, 1, 1], [], []>} : vector<32x128xbf16>, vector<128x1024xbf16>, vector<32x1024xf32> -> vector<32x1024xf32>
    %3 = arith.truncf %2 : vector<32x1024xf32> to vector<32x1024xbf16>
    %cst_3 = arith.constant 2.001950e-01 : bf16
    %4 = vector.broadcast %cst_3 : bf16 to vector<32x1024xbf16>
    %5 = arith.mulf %4, %3 : vector<32x1024xbf16>
    %6 = arith.maximumf %3, %5 : vector<32x1024xbf16>
    %c0_4 = arith.constant 0 : index
    %c0_5 = arith.constant 0 : index
    %7 = vector.load %arg3[%c0_4, %c0_5] : memref<1024x512xbf16, #tpu.memory_space<vmem>>, vector<1024x512xbf16>
    %cst_6 = arith.constant dense<0.000000e+00> : vector<32x512xf32>
    %8 = tpu.matmul %6, %7, %cst_6 {dimension_numbers = #tpu.dot_dimension_numbers<[1], [0], [0], [1], [0, 0, 1, 1], [], []>} : vector<32x1024xbf16>, vector<1024x512xbf16>, vector<32x512xf32> -> vector<32x512xf32>
    %c0_7 = arith.constant 0 : index
    %c0_8 = arith.constant 0 : index
    %9 = vector.load %arg4[%c0_7, %c0_8] : memref<1x512xf32, #tpu.memory_space<vmem>>, vector<1x512xf32>
    %10 = vector.broadcast %9 : vector<1x512xf32> to vector<32x512xf32>
    %11 = arith.addf %8, %10 : vector<32x512xf32>
    %cst_9 = arith.constant 2.000000e-01 : f32
    %12 = vector.broadcast %cst_9 : f32 to vector<32x512xf32>
    %13 = arith.mulf %12, %11 : vector<32x512xf32>
    %14 = arith.maximumf %11, %13 : vector<32x512xf32>
    %c0_10 = arith.constant 0 : index
    %c0_11 = arith.constant 0 : index
    %15 = vector.load %arg5[%c0_10, %c0_11] : memref<1x512xf32, #tpu.memory_space<vmem>>, vector<1x512xf32>
    %16 = vector.broadcast %15 : vector<1x512xf32> to vector<32x512xf32>
    %17 = arith.mulf %14, %16 : vector<32x512xf32>
    %cst_12 = arith.constant dense<0.000000e+00> : vector<32xf32>
    %18 = vector.multi_reduction <add>, %17, %cst_12 [1] : vector<32x512xf32> to vector<32xf32>
    %19 = vector.shape_cast %18 : vector<32xf32> to vector<32x1xf32>
    %c0_13 = arith.constant 0 : index
    %c0_14 = arith.constant 0 : index
    %20 = vector.load %arg6[%c0_13, %c0_14] : memref<1x1xf32, #tpu.memory_space<vmem>>, vector<1x1xf32>
    %21 = vector.broadcast %20 : vector<1x1xf32> to vector<32x1xf32>
    %22 = arith.addf %19, %21 : vector<32x1xf32>
    %cst_15 = arith.constant 0.000000e+00 : f32
    %23 = vector.broadcast %cst_15 : f32 to vector<32x1xf32>
    %24 = arith.subf %23, %22 : vector<32x1xf32>
    %25 = math.exp %24 : vector<32x1xf32>
    %cst_16 = arith.constant 1.000000e+00 : f32
    %26 = vector.broadcast %cst_16 : f32 to vector<32x1xf32>
    %27 = arith.addf %26, %25 : vector<32x1xf32>
    %28 = tpu.reciprocal %27 {approx = true} : vector<32x1xf32> -> vector<32x1xf32>
    %c0_17 = arith.constant 0 : index
    %c0_18 = arith.constant 0 : index
    %29 = vector.load %arg7[%c0_17, %c0_18] : memref<32x1xf32, #tpu.memory_space<vmem>>, vector<32x1xf32>
    tpu.vector_store %arg7[%c0_17, %c0_18], %28 {strides = array<i32>} : memref<32x1xf32, #tpu.memory_space<vmem>>, vector<32x1xf32>,
    return
  }
  func.func @transform_0(%arg0: i32) -> (i32, i32) {
    %c0_i32 = arith.constant 0 : i32
    %c0_i32_0 = arith.constant 0 : i32
    return %arg0, %c0_i32 : i32, i32
  }
  func.func @transform_1(%arg0: i32) -> (i32, i32) {
    %c0_i32 = arith.constant 0 : i32
    %c0_i32_0 = arith.constant 0 : i32
    %c0_i32_1 = arith.constant 0 : i32
    return %c0_i32, %c0_i32_0 : i32, i32
  }
  func.func @transform_2(%arg0: i32) -> (i32, i32) {
    %c0_i32 = arith.constant 0 : i32
    %c0_i32_0 = arith.constant 0 : i32
    %c0_i32_1 = arith.constant 0 : i32
    return %c0_i32, %c0_i32_0 : i32, i32
  }
  func.func @transform_3(%arg0: i32) -> (i32, i32) {
    %c0_i32 = arith.constant 0 : i32
    %c0_i32_0 = arith.constant 0 : i32
    %c0_i32_1 = arith.constant 0 : i32
    return %c0_i32, %c0_i32_0 : i32, i32
  }
  func.func @transform_4(%arg0: i32) -> (i32, i32) {
    %c0_i32 = arith.constant 0 : i32
    %c0_i32_0 = arith.constant 0 : i32
    %c0_i32_1 = arith.constant 0 : i32
    return %c0_i32, %c0_i32_0 : i32, i32
  }
  func.func @transform_5(%arg0: i32) -> (i32, i32) {
    %c0_i32 = arith.constant 0 : i32
    %c0_i32_0 = arith.constant 0 : i32
    %c0_i32_1 = arith.constant 0 : i32
    return %c0_i32, %c0_i32_0 : i32, i32
  }
  func.func @transform_6(%arg0: i32) -> (i32, i32) {
    %c0_i32 = arith.constant 0 : i32
    %c0_i32_0 = arith.constant 0 : i32
    return %arg0, %c0_i32 : i32, i32
  }
}

</mosaic_0001>

<bundles_post_ra>
// kernel: discriminator_forward.1
= control target key start
LH: loop header
LB: loop body
LE: loop exit
PB: predicated region body
PF: predicated region fallthrough
CT: control target
= control target key end

     0   :  { %s4290_s0 = inlined_call_operand.vmem [shape: bf16[64,128], index: 0, kind: input, shape index: {}]   ;;  %s4291_s1 = inlined_call_operand.hbm [shape: bf16[128,1024], index: 1, kind: input, shape index: {}]   ;;  %s4292_s2 = inlined_call_operand.hbm [shape: bf16[1024,512], index: 2, kind: input, shape index: {}]   ;;  %s4293_s3 = inlined_call_operand.vmem [shape: f32[1,512], index: 3, kind: input, shape index: {}]   ;;  %s4294_s4 = inlined_call_operand.vmem [shape: f32[1,512], index: 4, kind: input, shape index: {}]   ;;  %s4295_s5 = inlined_call_operand.<no memory space> [shape: f32[1,1], index: 5, kind: input, shape index: {}]   ;;  %s4296_s6 = inlined_call_operand.vmem [shape: f32[64,1], index: 6, kind: output, shape index: {}]  }
   0x1   :  { %v11_v0 = vstv %s4295_s5 }
   0x2   :  { %12 = vst [vmem:[#allocation2] sm:$0x1] %v11_v0 }
   0x3   :  { %13 = vsyncpa [#allocation4], 0 }
   0x4   :  { %14 = vsyncpa [#allocation6], 0  ;;  %s4090_s23 = smov 0  }
   0x5 LB: > { %s4045_s24 = smov [#allocation3]   ;;  %s3135_s26 = sadd.s32 4294967295, %s4043_s23   ;;  %s4043_s23 = sphi %s4090_s23, %s20_s23  }
   0x6   : > { %s194_s25 = sshll.u32 %s4045_s24, 4  ;;  %p3137_p0 = scmp.ge.s32.totalorder %s4043_s23, 1  ;;  %s195_s25 = int_to_ptr.vmem [resolvable:$true] %s194_s25 }
   0x7   : > { %p182_p1 = scmp.lt.s32.totalorder %s4043_s23, 3  ;;  %p4104_p3 = scmp.eq.s32.totalorder %s3135_s26, 0 }
   0x8   : > { %s4046_s28 = smov [#allocation5]   ;;  %s3973_s9 = scalar_lea.hbm %s4291_s1, 8192 }
   0x9   : > { %p4098_p2 = pnand %p3137_p0, %p182_p1  ;;  %s207_s29 = sshll.u32 %s4046_s28, 4  ;;  %s4116_s29 = int_to_ptr.vmem [resolvable:$true] %s207_s29 }
   0xa   : > { %s4301_s27 = scalar_select %p4104_p3, 1, 0 }
   0xb   : > { %s4300_s5 = scalar_select %p4098_p2, 1, 0 }
   0xc   : > { %p3545_p4 = pneg %p4098_p2  ;;  %p3974_p6 = scmp.ne.s32.totalorder %s4291_s1, %s3973_s9 }
   0xd   : > { %p3980_p10 = scmp.lt.u32.totalorder %s3973_s9, %s4291_s1 }
   0xe   : > { %p4112_p5 = pnand %p4104_p3, %p3545_p4 }
  0x10   : > { %p3975_p7 = pneg %p4112_p5 }
  0x12   : > { %p3976_p8 = pnand %p3975_p7, %p3974_p6 }
  0x14   : > { %p3977_p9 = pneg %p3976_p8 }
  0x16   : > { %p3982_p11 = pnand %p3980_p10, %p3977_p9 }
  0x18   : > { %3985 = shalt.err (!%p3982_p11)
}
  0x19   : > { %s3986_s14 = scalar_lea.vmem %s195_s25, 8192  ;;  %p3994_p1 = scmp.lt.s32.totalorder %s195_s25, %s195_s25 }
  0x1a   : > { %p3987_p12 = scmp.ne.s32.totalorder %s195_s25, %s3986_s14  ;;  %p3995_p4 = scmp.lt.s32.totalorder %s3986_s14, %s3986_s14 }
  0x1c   : > { %p3989_p13 = pnand %p3987_p12, %p3975_p7  ;;  %p3996_p3 = por %p3995_p4, %p3994_p1 }
  0x1e   : > { %p3990_p0 = pneg %p3989_p13 }
  0x20   : > { %p3997_p2 = pnand %p3996_p3, %p3990_p0 }
  0x22   : > { %4000 = shalt.err (!%p3997_p2)
}
  0x23   : > { %s4047_s15 = smov 512   ;;  %s4048_s16 = smov 32  }
  0x24   : > { %3548 = dma.hbm_to_vmem [thread:$0]  (!%p4112_p5), %s4291_s1, 8192, %s195_s25, [#allocation4], %s4047_s15, %s4047_s15, %s4048_s16  }
  0x25   : > { %s4001_s21 = scalar_lea.hbm %s4292_s2, 32768 }
  0x26   : > { %p4002_p6 = scmp.ne.s32.totalorder %s4292_s2, %s4001_s21  ;;  %p4008_p8 = scmp.lt.u32.totalorder %s4001_s21, %s4292_s2 }
  0x28   : > { %p4004_p2 = pnand %p4002_p6, %p3975_p7 }
  0x2a   : > { %p4005_p3 = pneg %p4004_p2 }
  0x2c   : > { %p4010_p9 = pnand %p4008_p8, %p4005_p3 }
  0x2e   : > { %4013 = shalt.err (!%p4010_p9)
}
  0x2f   : > { %s4014_s25 = scalar_lea.vmem %s4116_s29, 32768  ;;  %p4022_p13 = scmp.lt.s32.totalorder %s4116_s29, %s4116_s29 }
  0x30   : > { %p4015_p10 = scmp.ne.s32.totalorder %s4116_s29, %s4014_s25  ;;  %p4023_p0 = scmp.lt.s32.totalorder %s4014_s25, %s4014_s25 }
  0x32   : > { %p4017_p11 = pnand %p4015_p10, %p3975_p7  ;;  %p4024_p1 = por %p4023_p0, %p4022_p13 }
  0x34   : > { %p4018_p12 = pneg %p4017_p11 }
  0x36   : > { %p4025_p4 = pnand %p4024_p1, %p4018_p12 }
  0x38   : > { %4028 = shalt.err (!%p4025_p4)
}
  0x39   : > { %s4049_s8 = smov 256   ;;  %s4050_s9 = smov 16  }
  0x3a   : > { %3551 = dma.hbm_to_vmem [thread:$0]  (!%p4112_p5), %s4292_s2, 32768, %s4116_s29, [#allocation6], %s4049_s8, %s4049_s8, %s4050_s9  }
  0x3b   : > { %p4303_p6 = scmp.ne.s32.totalorder %s4300_s5, 0 }
  0x3c   : > { %p4304_p7 = scmp.ne.s32.totalorder (!%p4303_p6), %s4301_s27, 0 }
  0x3d   : > { %241 = sbr.rel (%p4303_p6) target bundleno = 933 (0x3a5), region = 44 }
  0x44   : > { %4034 = dma.done.wait (%p4304_p7), [#allocation4], 8192  }
  0x45   : > { %4036 = vsyncadd (%p4304_p7), [#allocation4], 4294959104 }
  0x46   : > { %4038 = dma.done.wait (%p4304_p7), [#allocation6], 32768  }
  0x47   : > { %4040 = vsyncadd (%p4304_p7), [#allocation6], 4294934528  ;;  %s3144_s30 = sshll.u32 %s3135_s26, 2  ;;  %v4051_v1 = vmov 0   ;;  %v293_v2 = vld [vmem:[#allocation3] sm:$0xff]  ;;  %v294_v15 = vld [vmem:[#allocation3 + $0x8] sm:$0xff] }
  0x48   : > { %721 = vmatprep.mubr.bf16.mxu0 %v4051_v1  ;;  %p276_p5 = scmp.lt.s32.totalorder %s3144_s30, 7  ;;  %774 = vmatprep.mubr.bf16.mxu1 %v4051_v1  ;;  %v297_v3 = vld [vmem:[#allocation3 + $0x20] sm:$0xff]  ;;  %v298_v16 = vld [vmem:[#allocation3 + $0x28] sm:$0xff]  ;;  %v295_v58 = vld [vmem:[#allocation3 + $0x10] sm:$0xff]  ;;  %vm3052_vm0 = vcmask 7168  }
  0x49   : > { %v301_v4 = vld [vmem:[#allocation3 + $0x40] sm:$0xff]  ;;  %v3151_v5 = vcombine.high %v293_v2, %v297_v3  ;;  %v3150_v6 = vcombine.low %v293_v2, %v297_v3  ;;  %v3153_v17 = vcombine.high %v294_v15, %v298_v16  ;;  %v3152_v18 = vcombine.low %v294_v15, %v298_v16  ;;  %v302_v19 = vld [vmem:[#allocation3 + $0x48] sm:$0xff]  ;;  %v299_v60 = vld [vmem:[#allocation3 + $0x30] sm:$0xff] }
  0x4a   : > { %s4306_s30 = smov (!%p276_p5, %s3144_s30), 7  ;;  %v305_v7 = vld [vmem:[#allocation3 + $0x60] sm:$0xff]  ;;  %v306_v20 = vld [vmem:[#allocation3 + $0x68] sm:$0xff]  ;;  %v3155_v2 = vcombine.high %v295_v58, %v299_v60  ;;  %v303_v3 = vld [vmem:[#allocation3 + $0x50] sm:$0xff] }
  0x4b   : > { %s3145_s5 = sshll.u32 %s4306_s30, 2  ;;  %v3159_v8 = vcombine.high %v301_v4, %v305_v7  ;;  %v309_v9 = vld [vmem:[#allocation3 + $0x80] sm:$0xff]  ;;  %689 = vmatprep.subr.bf16.mxu0 %v3151_v5  ;;  %v3158_v11 = vcombine.low %v301_v4, %v305_v7  ;;  %v3161_v22 = vcombine.high %v302_v19, %v306_v20  ;;  %v310_v23 = vld [vmem:[#allocation3 + $0x88] sm:$0xff]  ;;  %742 = vmatprep.subr.bf16.mxu1 %v3153_v17  ;;  %v307_v5 = vld [vmem:[#allocation3 + $0x70] sm:$0xff]  ;;  %s3147_s16 = sshll.u32 %s4306_s30, 3 }
  0x4c   : > { %v313_v10 = vld [vmem:[#allocation3 + $0xa0] sm:$0xff]  ;;  %690 = vmatpush1.bf16.msra.mxu0 %v3150_v6  ;;  %s4185_s29 = scalar_lea.vmem %s4290_s0, %s3145_s5  ;;  %v314_v24 = vld [vmem:[#allocation3 + $0xa8] sm:$0xff]  ;;  %743 = vmatpush1.bf16.msra.mxu1 %v3152_v18  ;;  %v3160_v28 = vcombine.low %v302_v19, %v306_v20  ;;  %v3162_v16 = vcombine.low %v303_v3, %v307_v5  ;;  %v304_v17 = vld [vmem:[#allocation3 + $0x58] sm:$0xff]  ;;  %s285_s19 = scalar_lea.vmem %s4296_s6, %s3147_s16 }
  0x4d   : > { %691 = vmatprep.subr.bf16.mxu0 %v3159_v8  ;;  %v3167_v12 = vcombine.high %v309_v9, %v313_v10  ;;  %v317_v13 = vld [vmem:[#allocation3 + $0xc0] sm:$0xff]  ;;  %v3166_v21 = vcombine.low %v309_v9, %v313_v10  ;;  %744 = vmatprep.subr.bf16.mxu1 %v3161_v22  ;;  %v3169_v29 = vcombine.high %v310_v23, %v314_v24  ;;  %v318_v31 = vld [vmem:[#allocation3 + $0xc8] sm:$0xff]  ;;  %v296_v9 = vld [vmem:[#allocation3 + $0x18] sm:$0xff] }
  0x4e   : > { %v321_v14 = vld [vmem:[#allocation3 + $0xe0] sm:$0xff]  ;;  %v322_v32 = vld [vmem:[#allocation3 + $0xe8] sm:$0xff]  ;;  %v3168_v36 = vcombine.low %v310_v23, %v314_v24  ;;  %v3154_v8 = vcombine.low %v295_v58, %v299_v60  ;;  %v300_v10 = vld [vmem:[#allocation3 + $0x38] sm:$0xff] }
  0x4f   : > { %v3175_v25 = vcombine.high %v317_v13, %v321_v14  ;;  %v325_v26 = vld [vmem:[#allocation3 + $0x100] sm:$0xff]  ;;  %v3174_v30 = vcombine.low %v317_v13, %v321_v14  ;;  %v3177_v37 = vcombine.high %v318_v31, %v322_v32  ;;  %v326_v39 = vld [vmem:[#allocation3 + $0x108] sm:$0xff]  ;;  %v3176_v44 = vcombine.low %v318_v31, %v322_v32  ;;  %v315_v14 = vld [vmem:[#allocation3 + $0xb0] sm:$0xff] }
  0x50   : > { %692 = vmatpush1.bf16.msra.mxu0 %v3158_v11  ;;  %v329_v27 = vld [vmem:[#allocation3 + $0x120] sm:$0xff]  ;;  %745 = vmatpush1.bf16.msra.mxu1 %v3160_v28  ;;  %v330_v40 = vld [vmem:[#allocation3 + $0x128] sm:$0xff]  ;;  %v3163_v11 = vcombine.high %v303_v3, %v307_v5  ;;  %v3157_v15 = vcombine.high %v296_v9, %v300_v10  ;;  %v308_v18 = vld [vmem:[#allocation3 + $0x78] sm:$0xff]  ;;  %v3156_v22 = vcombine.low %v296_v9, %v300_v10 }
  0x51   : > { %693 = vmatprep.subr.bf16.mxu0 %v3167_v12  ;;  %v3183_v33 = vcombine.high %v325_v26, %v329_v27  ;;  %v333_v34 = vld [vmem:[#allocation3 + $0x140] sm:$0xff]  ;;  %746 = vmatprep.subr.bf16.mxu1 %v3169_v29  ;;  %v3182_v38 = vcombine.low %v325_v26, %v329_v27  ;;  %v3185_v45 = vcombine.high %v326_v39, %v330_v40  ;;  %v334_v47 = vld [vmem:[#allocation3 + $0x148] sm:$0xff]  ;;  %v311_v12 = vld [vmem:[#allocation3 + $0x90] sm:$0xff] }
  0x52   : > { %v337_v35 = vld [vmem:[#allocation3 + $0x160] sm:$0xff]  ;;  %v338_v48 = vld [vmem:[#allocation3 + $0x168] sm:$0xff]  ;;  %v3184_v52 = vcombine.low %v326_v39, %v330_v40  ;;  %v3171_v19 = vcombine.high %v311_v12, %v315_v14  ;;  %v319_v20 = vld [vmem:[#allocation3 + $0xd0] sm:$0xff]  ;;  %v3165_v24 = vcombine.high %v304_v17, %v308_v18  ;;  %v3164_v31 = vcombine.low %v304_v17, %v308_v18 }
  0x53   : > { %v3191_v41 = vcombine.high %v333_v34, %v337_v35  ;;  %v341_v42 = vld [vmem:[#allocation3 + $0x180] sm:$0xff]  ;;  %v3190_v46 = vcombine.low %v333_v34, %v337_v35  ;;  %v3193_v53 = vcombine.high %v334_v47, %v338_v48  ;;  %v342_v55 = vld [vmem:[#allocation3 + $0x188] sm:$0xff]  ;;  %v3192_v59 = vcombine.low %v334_v47, %v338_v48  ;;  %v312_v26 = vld [vmem:[#allocation3 + $0x98] sm:$0xff] }
  0x54   : > { %694 = vmatpush1.bf16.msra.mxu0 %v3166_v21  ;;  %v345_v43 = vld [vmem:[#allocation3 + $0x1a0] sm:$0xff]  ;;  %747 = vmatpush1.bf16.msra.mxu1 %v3168_v36  ;;  %v346_v56 = vld [vmem:[#allocation3 + $0x1a8] sm:$0xff]  ;;  %v323_v21 = vld [vmem:[#allocation3 + $0xf0] sm:$0xff] }
  0x55   : > { %695 = vmatprep.subr.bf16.mxu0 %v3175_v25  ;;  %748 = vmatprep.subr.bf16.mxu1 %v3177_v37  ;;  %v3199_v49 = vcombine.high %v341_v42, %v345_v43  ;;  %v349_v50 = vld [vmem:[#allocation3 + $0x1c0] sm:$0xff]  ;;  %v3198_v54 = vcombine.low %v341_v42, %v345_v43  ;;  %v3201_v61 = vcombine.high %v342_v55, %v346_v56  ;;  %v350_v63 = vld [vmem:[#allocation3 + $0x1c8] sm:$0xff]  ;;  %v316_v27 = vld [vmem:[#allocation3 + $0xb8] sm:$0xff] }
  0x56   : > { %v353_v51 = vld [vmem:[#allocation3 + $0x1e0] sm:$0xff]  ;;  %v354_v0 = vld [vmem:[#allocation3 + $0x1e8] sm:$0xff]  ;;  %v3200_v4 = vcombine.low %v342_v55, %v346_v56  ;;  %v3170_v25 = vcombine.low %v311_v12, %v315_v14  ;;  %v3179_v28 = vcombine.high %v319_v20, %v323_v21  ;;  %v327_v29 = vld [vmem:[#allocation3 + $0x110] sm:$0xff]  ;;  %v3173_v32 = vcombine.high %v312_v26, %v316_v27 }
  0x57   : > { %v3207_v57 = vcombine.high %v349_v50, %v353_v51  ;;  %v3206_v62 = vcombine.low %v349_v50, %v353_v51  ;;  %v4188_v6 = vld [vmem:[%s4185_s29] sm:$0xff]   ;;  %v3209_v7 = vcombine.high %v350_v63, %v354_v0  ;;  %v3208_v13 = vcombine.low %v350_v63, %v354_v0  ;;  %v4193_v23 = vld [vmem:[%s4185_s29 + $0x8] sm:$0xff]   ;;  %v335_v37 = vld [vmem:[#allocation3 + $0x150] sm:$0xff] }
  0x58   : > { %696 = vmatpush1.bf16.msra.mxu0 %v3174_v30  ;;  %749 = vmatpush1.bf16.msra.mxu1 %v3176_v44  ;;  %v331_v30 = vld [vmem:[#allocation3 + $0x130] sm:$0xff]  ;;  %v320_v34 = vld [vmem:[#allocation3 + $0xd8] sm:$0xff]  ;;  %v3172_v39 = vcombine.low %v312_v26, %v316_v27 }
  0x59   : > { %697 = vmatprep.subr.bf16.mxu0 %v3183_v33  ;;  %750 = vmatprep.subr.bf16.mxu1 %v3185_v45  ;;  %v3178_v33 = vcombine.low %v319_v20, %v323_v21  ;;  %v324_v35 = vld [vmem:[#allocation3 + $0xf8] sm:$0xff]  ;;  %v3187_v36 = vcombine.high %v327_v29, %v331_v30  ;;  %v343_v45 = vld [vmem:[#allocation3 + $0x190] sm:$0xff] }
  0x5a   : > { %v3181_v40 = vcombine.high %v320_v34, %v324_v35  ;;  %v328_v42 = vld [vmem:[#allocation3 + $0x118] sm:$0xff]  ;;  %v3180_v47 = vcombine.low %v320_v34, %v324_v35  ;;  %v3575_v3 = vld [vmem:[#allocation5 + $0x4] ss:$16 sps:$4 sm:$0xff]   ;;  %v3573_v5 = vld [vmem:[#allocation5] ss:$16 sps:$4 sm:$0xff]  }
  0x5b   : > { %v332_v43 = vld [vmem:[#allocation3 + $0x138] sm:$0xff]  ;;  %v3587_v12 = vld [vmem:[#allocation5 + $0x44] ss:$16 sps:$4 sm:$0xff]   ;;  %v3615_v34 = vld [vmem:[#allocation5 + $0xe0] ss:$16 sps:$4 sm:$0xff]  }
  0x5c   : > { %698 = vmatpush1.bf16.msra.mxu0 %v3182_v38  ;;  %751 = vmatpush1.bf16.msra.mxu1 %v3184_v52  ;;  %v339_v38 = vld [vmem:[#allocation3 + $0x170] sm:$0xff]  ;;  %v3189_v48 = vcombine.high %v328_v42, %v332_v43  ;;  %v336_v50 = vld [vmem:[#allocation3 + $0x158] sm:$0xff]  ;;  %v3188_v55 = vcombine.low %v328_v42, %v332_v43 }
  0x5d   : > { %699 = vmatprep.subr.bf16.mxu0 %v3191_v41  ;;  %752 = vmatprep.subr.bf16.mxu1 %v3193_v53  ;;  %v3186_v41 = vcombine.low %v327_v29, %v331_v30  ;;  %v3195_v44 = vcombine.high %v335_v37, %v339_v38  ;;  %v340_v51 = vld [vmem:[#allocation3 + $0x178] sm:$0xff]  ;;  %v351_v53 = vld [vmem:[#allocation3 + $0x1d0] sm:$0xff] }
  0x5e   : > { %v3197_v56 = vcombine.high %v336_v50, %v340_v51  ;;  %v344_v58 = vld [vmem:[#allocation3 + $0x198] sm:$0xff]  ;;  %v3599_v20 = vld [vmem:[#allocation5 + $0x84] ss:$16 sps:$4 sm:$0xff]   ;;  %v3609_v30 = vld [vmem:[#allocation5 + $0xc0] ss:$16 sps:$4 sm:$0xff]  }
  0x5f   : > { %v352_v63 = vld [vmem:[#allocation3 + $0x1d8] sm:$0xff]  ;;  %v3611_v27 = vld [vmem:[#allocation5 + $0xc4] ss:$16 sps:$4 sm:$0xff]  }
  0x60   : > { %700 = vmatpush1.bf16.msra.mxu0 %v3190_v46  ;;  %753 = vmatpush1.bf16.msra.mxu1 %v3192_v59  ;;  %v347_v46 = vld [vmem:[#allocation3 + $0x1b0] sm:$0xff]  ;;  %v348_v59 = vld [vmem:[#allocation3 + $0x1b8] sm:$0xff] }
  0x61   : > { %701 = vmatprep.subr.bf16.mxu0 %v3199_v49  ;;  %754 = vmatprep.subr.bf16.mxu1 %v3201_v61  ;;  %v3194_v49 = vcombine.low %v335_v37, %v339_v38  ;;  %v3203_v52 = vcombine.high %v343_v45, %v347_v46  ;;  %v3196_v61 = vcombine.low %v336_v50, %v340_v51  ;;  %v3578_v9 = vld [vmem:[#allocation5 + $0xc] ss:$16 sps:$4 sm:$0xff]   ;;  %v3582_v17 = vld [vmem:[#allocation5 + $0x28] ss:$16 sps:$4 sm:$0xff]   ;;  %v3621_v37 = vld [vmem:[#allocation5 + $0x100] ss:$16 sps:$4 sm:$0xff]  }
  0x62   : > { %v3584_v14 = vld [vmem:[#allocation5 + $0x2c] ss:$16 sps:$4 sm:$0xff]   ;;  %v3588_v21 = vld [vmem:[#allocation5 + $0x48] ss:$16 sps:$4 sm:$0xff]   ;;  %v3629_v38 = vld [vmem:[#allocation5 + $0x124] ss:$16 sps:$4 sm:$0xff]  }
  0x63   : > { %v3590_v18 = vld [vmem:[#allocation5 + $0x4c] ss:$16 sps:$4 sm:$0xff]   ;;  %v3594_v26 = vld [vmem:[#allocation5 + $0x68] ss:$16 sps:$4 sm:$0xff]   ;;  %v3635_v42 = vld [vmem:[#allocation5 + $0x144] ss:$16 sps:$4 sm:$0xff]  }
  0x64   : > { %702 = vmatpush1.bf16.msra.mxu0 %v3198_v54  ;;  %755 = vmatpush1.bf16.msra.mxu1 %v3200_v4  ;;  %v355_v54 = vld [vmem:[#allocation3 + $0x1f0] sm:$0xff]  ;;  %v3204_v4 = vcombine.low %v344_v58, %v348_v59  ;;  %v3608_v29 = vld [vmem:[#allocation5 + $0xac] ss:$16 sps:$4 sm:$0xff]   ;;  %v3612_v35 = vld [vmem:[#allocation5 + $0xc8] ss:$16 sps:$4 sm:$0xff]  }
  0x65   : > { %703 = vmatprep.subr.bf16.mxu0 %v3207_v57  ;;  %756 = vmatprep.subr.bf16.mxu1 %v3209_v7  ;;  %v3202_v57 = vcombine.low %v343_v45, %v347_v46  ;;  %v3211_v60 = vcombine.high %v351_v53, %v355_v54  ;;  %v3210_v0 = vcombine.low %v351_v53, %v355_v54  ;;  %v3624_v43 = vld [vmem:[#allocation5 + $0x108] ss:$16 sps:$4 sm:$0xff]   ;;  %v3633_v45 = vld [vmem:[#allocation5 + $0x140] ss:$16 sps:$4 sm:$0xff]   ;;  %v3641_v46 = vld [vmem:[#allocation5 + $0x164] ss:$16 sps:$4 sm:$0xff]  }
  0x66   : > { %v3647_v50 = vld [vmem:[#allocation5 + $0x184] ss:$16 sps:$4 sm:$0xff]   ;;  %v3636_v51 = vld [vmem:[#allocation5 + $0x148] ss:$16 sps:$4 sm:$0xff]   ;;  %v3645_v53 = vld [vmem:[#allocation5 + $0x180] ss:$16 sps:$4 sm:$0xff]  }
  0x67   : > { %v3653_v54 = vld [vmem:[#allocation5 + $0x1a4] ss:$16 sps:$4 sm:$0xff]  }
  0x68   : > { %704 = vmatpush1.bf16.msra.mxu0 %v3206_v62  ;;  %757 = vmatpush1.bf16.msra.mxu1 %v3208_v13  ;;  %v3205_v62 = vcombine.high %v344_v58, %v348_v59  ;;  %v3576_v13 = vld [vmem:[#allocation5 + $0x8] ss:$16 sps:$4 sm:$0xff]   ;;  %v3659_v59 = vld [vmem:[#allocation5 + $0x1c4] ss:$16 sps:$4 sm:$0xff]  }
  0x69   : > { %795 = vmatprep.subr.bf16.mxu0 %v3155_v2  ;;  %848 = vmatprep.subr.bf16.mxu1 %v3157_v15  ;;  %v356_v2 = vld [vmem:[#allocation3 + $0x1f8] sm:$0xff]  ;;  %v3585_v15 = vld [vmem:[#allocation5 + $0x40] ss:$16 sps:$4 sm:$0xff]  }
  0x6a   : > { %v3213_v7 = vcombine.high %v352_v63, %v356_v2  ;;  %v3212_v10 = vcombine.low %v352_v63, %v356_v2  ;;  %v3648_v58 = vld [vmem:[#allocation5 + $0x188] ss:$16 sps:$4 sm:$0xff]   ;;  %v3665_v63 = vld [vmem:[#allocation5 + $0x1e4] ss:$16 sps:$4 sm:$0xff]   ;;  %v3663_v2 = vld [vmem:[#allocation5 + $0x1e0] ss:$16 sps:$4 sm:$0xff]  }
  0x6b   : > { %722 = vmatmul.mubr.bf16.vlgmr.msra.gmra.mrb[0].mxu0 %v4188_v6  ;;  %775 = vmatmul.mubr.bf16.vlgmr.msra.gmra.mrb[0].mxu1 %v4188_v6 }
  0x6c   : > { %731 = vmatprep.mubr.bf16.mxu0 %v4051_v1  ;;  %796 = vmatpush1.bf16.msra.mxu0 %v3154_v8  ;;  %v3581_v8 = vld [vmem:[#allocation5 + $0x24] ss:$16 sps:$4 sm:$0xff]  }
  0x6d   : > { %797 = vmatprep.subr.bf16.mxu0 %v3163_v11  ;;  %784 = vmatprep.mubr.bf16.mxu1 %v4051_v1  ;;  %v3579_v11 = vld [vmem:[#allocation5 + $0x20] ss:$16 sps:$4 sm:$0xff]  }
  0x6e   : > { %849 = vmatpush1.bf16.msra.mxu1 %v3156_v22  ;;  %v3596_v22 = vld [vmem:[#allocation5 + $0x6c] ss:$16 sps:$4 sm:$0xff]  }
  0x6f   : > { %850 = vmatprep.subr.bf16.mxu1 %v3165_v24  ;;  %v3597_v24 = vld [vmem:[#allocation5 + $0x80] ss:$16 sps:$4 sm:$0xff]  }
  0x70   : > { %798 = vmatpush1.bf16.msra.mxu0 %v3162_v16  ;;  %v3593_v16 = vld [vmem:[#allocation5 + $0x64] ss:$16 sps:$4 sm:$0xff]  }
  0x71   : > { %799 = vmatprep.subr.bf16.mxu0 %v3171_v19  ;;  %v3591_v19 = vld [vmem:[#allocation5 + $0x60] ss:$16 sps:$4 sm:$0xff]  }
  0x72   : > { %851 = vmatpush1.bf16.msra.mxu1 %v3164_v31  ;;  %v3617_v31 = vld [vmem:[#allocation5 + $0xe4] ss:$16 sps:$4 sm:$0xff]  }
  0x73   : > { %732 = vmatmul.mubr.bf16.gmra.mrb[4].mxu0 %v4193_v23  ;;  %852 = vmatprep.subr.bf16.mxu1 %v3173_v32  ;;  %v3606_v32 = vld [vmem:[#allocation5 + $0xa8] ss:$16 sps:$4 sm:$0xff]  }
  0x74   : > { %800 = vmatpush1.bf16.msra.mxu0 %v3170_v25  ;;  %827 = vmatprep.mubr.bf16.mxu0 %v4051_v1  ;;  %v3605_v25 = vld [vmem:[#allocation5 + $0xa4] ss:$16 sps:$4 sm:$0xff]  }
  0x75   : > { %801 = vmatprep.subr.bf16.mxu0 %v3179_v28  ;;  %785 = vmatmul.mubr.bf16.gmra.mrb[4].mxu1 %v4193_v23  ;;  %v3600_v28 = vld [vmem:[#allocation5 + $0x88] ss:$16 sps:$4 sm:$0xff]  }
  0x76   : > { %853 = vmatpush1.bf16.msra.mxu1 %v3172_v39  ;;  %880 = vmatprep.mubr.bf16.mxu1 %v4051_v1  ;;  %v3618_v39 = vld [vmem:[#allocation5 + $0xe8] ss:$16 sps:$4 sm:$0xff]  }
  0x77   : > { %854 = vmatprep.subr.bf16.mxu1 %v3181_v40  ;;  %v3626_v40 = vld [vmem:[#allocation5 + $0x10c] ss:$16 sps:$4 sm:$0xff]  }
  0x78   : > { %802 = vmatpush1.bf16.msra.mxu0 %v3178_v33  ;;  %v3614_v33 = vld [vmem:[#allocation5 + $0xcc] ss:$16 sps:$4 sm:$0xff]  }
  0x79   : > { %803 = vmatprep.subr.bf16.mxu0 %v3187_v36  ;;  %v3620_v36 = vld [vmem:[#allocation5 + $0xec] ss:$16 sps:$4 sm:$0xff]  }
  0x7a   : > { %855 = vmatpush1.bf16.msra.mxu1 %v3180_v47  ;;  %v3630_v47 = vld [vmem:[#allocation5 + $0x128] ss:$16 sps:$4 sm:$0xff]  }
  0x7b   : > { %856 = vmatprep.subr.bf16.mxu1 %v3189_v48  ;;  %v3638_v48 = vld [vmem:[#allocation5 + $0x14c] ss:$16 sps:$4 sm:$0xff]  }
  0x7c   : > { %804 = vmatpush1.bf16.msra.mxu0 %v3186_v41  ;;  %v3627_v41 = vld [vmem:[#allocation5 + $0x120] ss:$16 sps:$4 sm:$0xff]  }
  0x7d   : > { %805 = vmatprep.subr.bf16.mxu0 %v3195_v44  ;;  %v3632_v44 = vld [vmem:[#allocation5 + $0x12c] ss:$16 sps:$4 sm:$0xff]  }
  0x7e   : > { %857 = vmatpush1.bf16.msra.mxu1 %v3188_v55  ;;  %v3642_v55 = vld [vmem:[#allocation5 + $0x168] ss:$16 sps:$4 sm:$0xff]  }
  0x7f   : > { %858 = vmatprep.subr.bf16.mxu1 %v3197_v56  ;;  %v3650_v56 = vld [vmem:[#allocation5 + $0x18c] ss:$16 sps:$4 sm:$0xff]  }
  0x80   : > { %806 = vmatpush1.bf16.msra.mxu0 %v3194_v49  ;;  %v3639_v49 = vld [vmem:[#allocation5 + $0x160] ss:$16 sps:$4 sm:$0xff]  }
  0x81   : > { %807 = vmatprep.subr.bf16.mxu0 %v3203_v52  ;;  %v3644_v52 = vld [vmem:[#allocation5 + $0x16c] ss:$16 sps:$4 sm:$0xff]  }
  0x82   : > { %859 = vmatpush1.bf16.msra.mxu1 %v3196_v61  ;;  %v3657_v61 = vld [vmem:[#allocation5 + $0x1c0] ss:$16 sps:$4 sm:$0xff]  }
  0x83   : > { %860 = vmatprep.subr.bf16.mxu1 %v3205_v62  ;;  %v3654_v62 = vld [vmem:[#allocation5 + $0x1a8] ss:$16 sps:$4 sm:$0xff]  }
  0x84   : > { %808 = vmatpush1.bf16.msra.mxu0 %v3202_v57  ;;  %v3651_v57 = vld [vmem:[#allocation5 + $0x1a0] ss:$16 sps:$4 sm:$0xff]  }
  0x85   : > { %809 = vmatprep.subr.bf16.mxu0 %v3211_v60  ;;  %v3656_v60 = vld [vmem:[#allocation5 + $0x1ac] ss:$16 sps:$4 sm:$0xff]  }
  0x86   : > { %861 = vmatpush1.bf16.msra.mxu1 %v3204_v4  ;;  %v3671_v4 = vld [vmem:[#allocation5 + $0x204] ss:$16 sps:$4 sm:$0xff]  }
  0x87   : > { %862 = vmatprep.subr.bf16.mxu1 %v3213_v7  ;;  %v3666_v7 = vld [vmem:[#allocation5 + $0x1e8] ss:$16 sps:$4 sm:$0xff]  }
  0x88   : > { %810 = vmatpush1.bf16.msra.mxu0 %v3210_v0  ;;  %v3662_v0 = vld [vmem:[#allocation5 + $0x1cc] ss:$16 sps:$4 sm:$0xff]  }
  0x89   : > { %2507 = vmatprep.subr.bf16.mxu0 %v3575_v3  ;;  %v3660_v3 = vld [vmem:[#allocation5 + $0x1c8] ss:$16 sps:$4 sm:$0xff]  }
  0x8a   : > { %863 = vmatpush1.bf16.msra.mxu1 %v3212_v10 }
  0x8b   : > { %828 = vmatmul.mubr.bf16.vlgmr.msra.gmra.mrb[8].mxu0 %v4188_v6  ;;  %2719 = vmatprep.subr.bf16.mxu1 %v3578_v9 }
  0x8c   : > { %837 = vmatprep.mubr.bf16.mxu0 %v4051_v1  ;;  %2508 = vmatpush1.bf16.msra.mxu0 %v3573_v5  ;;  %v3668_v5 = vld [vmem:[#allocation5 + $0x1ec] ss:$16 sps:$4 sm:$0xff]  }
  0x8d   : > { %2509 = vmatprep.subr.bf16.mxu0 %v3581_v8  ;;  %881 = vmatmul.mubr.bf16.vlgmr.msra.gmra.mrb[8].mxu1 %v4188_v6  ;;  %v3602_v6 = vld [vmem:[#allocation5 + $0x8c] ss:$16 sps:$4 sm:$0xff]  }
  0x8e   : > { %2720 = vmatpush1.bf16.msra.mxu1 %v3576_v13  ;;  %890 = vmatprep.mubr.bf16.mxu1 %v4051_v1  ;;  %v3603_v1 = vld [vmem:[#allocation5 + $0xa0] ss:$16 sps:$4 sm:$0xff]   ;;  %v3674_v8 = vld [vmem:[#allocation5 + $0x20c] ss:$16 sps:$4 sm:$0xff]  }
  0x8f   : > { %2721 = vmatprep.subr.bf16.mxu1 %v3584_v14 }
  0x90   : > { %2510 = vmatpush1.bf16.msra.mxu0 %v3579_v11 }
  0x91   : > { %2511 = vmatprep.subr.bf16.mxu0 %v3587_v12 }
  0x92   : > { %2722 = vmatpush1.bf16.msra.mxu1 %v3582_v17 }
  0x93   : > { %838 = vmatmul.mubr.bf16.gmra.mrb[12].mxu0 %v4193_v23  ;;  %2723 = vmatprep.subr.bf16.mxu1 %v3590_v18 }
  0x94   : > { %2512 = vmatpush1.bf16.msra.mxu0 %v3585_v15 }
  0x95   : > { %2513 = vmatprep.subr.bf16.mxu0 %v3593_v16  ;;  %891 = vmatmul.mubr.bf16.gmra.mrb[12].mxu1 %v4193_v23  ;;  %v3623_v23 = vld [vmem:[#allocation5 + $0x104] ss:$16 sps:$4 sm:$0xff]  }
  0x96   : > { %2724 = vmatpush1.bf16.msra.mxu1 %v3588_v21  ;;  %v3672_v21 = vld [vmem:[#allocation5 + $0x208] ss:$16 sps:$4 sm:$0xff]  }
  0x97   : > { %2725 = vmatprep.subr.bf16.mxu1 %v3596_v22 }
  0x98   : > { %2514 = vmatpush1.bf16.msra.mxu0 %v3591_v19 }
  0x99   : > { %2515 = vmatprep.subr.bf16.mxu0 %v3599_v20  ;;  %v3669_v20 = vld [vmem:[#allocation5 + $0x200] ss:$16 sps:$4 sm:$0xff]  }
  0x9a   : > { %2726 = vmatpush1.bf16.msra.mxu1 %v3594_v26  ;;  %v3677_v26 = vld [vmem:[#allocation5 + $0x224] ss:$16 sps:$4 sm:$0xff]  }
  0x9b   : > { %2727 = vmatprep.subr.bf16.mxu1 %v3602_v6  ;;  %v3680_v6 = vld [vmem:[#allocation5 + $0x22c] ss:$16 sps:$4 sm:$0xff]  }
  0x9c   : > { %2516 = vmatpush1.bf16.msra.mxu0 %v3597_v24 }
  0x9d   : > { %2517 = vmatprep.subr.bf16.mxu0 %v3605_v25 }
  0x9e   : > { %2728 = vmatpush1.bf16.msra.mxu1 %v3600_v28 }
  0x9f   : > { %2729 = vmatprep.subr.bf16.mxu1 %v3608_v29 }
  0xa0   : > { %2518 = vmatpush1.bf16.msra.mxu0 %v3603_v1 }
  0xa1   : > { %2519 = vmatprep.subr.bf16.mxu0 %v3611_v27 }
  0xa2   : > { %2730 = vmatpush1.bf16.msra.mxu1 %v3606_v32 }
  0xa3   : > { %2731 = vmatprep.subr.bf16.mxu1 %v3614_v33  ;;  %v3675_v33 = vld [vmem:[#allocation5 + $0x220] ss:$16 sps:$4 sm:$0xff]  }
  0xa4   : > { %2520 = vmatpush1.bf16.msra.mxu0 %v3609_v30 }
  0xa5   : > { %2521 = vmatprep.subr.bf16.mxu0 %v3617_v31 }
  0xa6   : > { %2732 = vmatpush1.bf16.msra.mxu1 %v3612_v35  ;;  %v3683_v35 = vld [vmem:[#allocation5 + $0x244] ss:$16 sps:$4 sm:$0xff]  }
  0xa7   : > { %2733 = vmatprep.subr.bf16.mxu1 %v3620_v36  ;;  %v3686_v36 = vld [vmem:[#allocation5 + $0x24c] ss:$16 sps:$4 sm:$0xff]  }
  0xa8   : > { %2522 = vmatpush1.bf16.msra.mxu0 %v3615_v34  ;;  %v3678_v34 = vld [vmem:[#allocation5 + $0x228] ss:$16 sps:$4 sm:$0xff]  }
  0xa9   : > { %2523 = vmatprep.subr.bf16.mxu0 %v3623_v23 }
  0xaa   : > { %2734 = vmatpush1.bf16.msra.mxu1 %v3618_v39 }
  0xab   : > { %2735 = vmatprep.subr.bf16.mxu1 %v3626_v40 }
  0xac   : > { %2524 = vmatpush1.bf16.msra.mxu0 %v3621_v37 }
  0xad   : > { %2525 = vmatprep.subr.bf16.mxu0 %v3629_v38 }
  0xae   : > { %2736 = vmatpush1.bf16.msra.mxu1 %v3624_v43  ;;  %v3681_v43 = vld [vmem:[#allocation5 + $0x240] ss:$16 sps:$4 sm:$0xff]  }
  0xaf   : > { %2737 = vmatprep.subr.bf16.mxu1 %v3632_v44  ;;  %v3684_v44 = vld [vmem:[#allocation5 + $0x248] ss:$16 sps:$4 sm:$0xff]  }
  0xb0   : > { %2526 = vmatpush1.bf16.msra.mxu0 %v3627_v41 }
  0xb1   : > { %2527 = vmatprep.subr.bf16.mxu0 %v3635_v42 }
  0xb2   : > { %2738 = vmatpush1.bf16.msra.mxu1 %v3630_v47  ;;  %v3689_v47 = vld [vmem:[#allocation5 + $0x264] ss:$16 sps:$4 sm:$0xff]  }
  0xb3   : > { %2739 = vmatprep.subr.bf16.mxu1 %v3638_v48  ;;  %v3692_v48 = vld [vmem:[#allocation5 + $0x26c] ss:$16 sps:$4 sm:$0xff]  }
  0xb4   : > { %2528 = vmatpush1.bf16.msra.mxu0 %v3633_v45 }
  0xb5   : > { %2529 = vmatprep.subr.bf16.mxu0 %v3641_v46 }
  0xb6   : > { %2740 = vmatpush1.bf16.msra.mxu1 %v3636_v51 }
  0xb7   : > { %2741 = vmatprep.subr.bf16.mxu1 %v3644_v52 }
  0xb8   : > { %2530 = vmatpush1.bf16.msra.mxu0 %v3639_v49 }
  0xb9   : > { %2531 = vmatprep.subr.bf16.mxu0 %v3647_v50 }
  0xba   : > { %2742 = vmatpush1.bf16.msra.mxu1 %v3642_v55  ;;  %v3695_v55 = vld [vmem:[#allocation5 + $0x284] ss:$16 sps:$4 sm:$0xff]  }
  0xbb   : > { %2743 = vmatprep.subr.bf16.mxu1 %v3650_v56  ;;  %v3698_v56 = vld [vmem:[#allocation5 + $0x28c] ss:$16 sps:$4 sm:$0xff]  }
  0xbc   : > { %2532 = vmatpush1.bf16.msra.mxu0 %v3645_v53  ;;  %v3687_v53 = vld [vmem:[#allocation5 + $0x260] ss:$16 sps:$4 sm:$0xff]  }
  0xbd   : > { %2533 = vmatprep.subr.bf16.mxu0 %v3653_v54  ;;  %v3690_v54 = vld [vmem:[#allocation5 + $0x268] ss:$16 sps:$4 sm:$0xff]  }
  0xbe   : > { %2744 = vmatpush1.bf16.msra.mxu1 %v3648_v58  ;;  %v3696_v58 = vld [vmem:[#allocation5 + $0x288] ss:$16 sps:$4 sm:$0xff]  }
  0xbf   : > { %2745 = vmatprep.subr.bf16.mxu1 %v3656_v60  ;;  %v3704_v60 = vld [vmem:[#allocation5 + $0x2ac] ss:$16 sps:$4 sm:$0xff]  }
  0xc0   : > { %2534 = vmatpush1.bf16.msra.mxu0 %v3651_v57  ;;  %v3693_v57 = vld [vmem:[#allocation5 + $0x280] ss:$16 sps:$4 sm:$0xff]  }
  0xc1   : > { %2535 = vmatprep.subr.bf16.mxu0 %v3659_v59  ;;  %v3701_v59 = vld [vmem:[#allocation5 + $0x2a4] ss:$16 sps:$4 sm:$0xff]  }
  0xc2   : > { %2746 = vmatpush1.bf16.msra.mxu1 %v3654_v62  ;;  %v3702_v62 = vld [vmem:[#allocation5 + $0x2a8] ss:$16 sps:$4 sm:$0xff]  }
  0xc3   : > { %2747 = vmatprep.subr.bf16.mxu1 %v3662_v0  ;;  %v3710_v0 = vld [vmem:[#allocation5 + $0x2cc] ss:$16 sps:$4 sm:$0xff]  }
  0xc4   : > { %2536 = vmatpush1.bf16.msra.mxu0 %v3657_v61  ;;  %v3699_v61 = vld [vmem:[#allocation5 + $0x2a0] ss:$16 sps:$4 sm:$0xff]  }
  0xc5   : > { %2537 = vmatprep.subr.bf16.mxu0 %v3665_v63  ;;  %v3707_v63 = vld [vmem:[#allocation5 + $0x2c4] ss:$16 sps:$4 sm:$0xff]  }
  0xc6   : > { %2748 = vmatpush1.bf16.msra.mxu1 %v3660_v3  ;;  %v3708_v3 = vld [vmem:[#allocation5 + $0x2c8] ss:$16 sps:$4 sm:$0xff]  }
  0xc7   : > { %2749 = vmatprep.subr.bf16.mxu1 %v3668_v5  ;;  %v3713_v5 = vld [vmem:[#allocation5 + $0x2e4] ss:$16 sps:$4 sm:$0xff]  }
  0xc8   : > { %2538 = vmatpush1.bf16.msra.mxu0 %v3663_v2  ;;  %v3705_v2 = vld [vmem:[#allocation5 + $0x2c0] ss:$16 sps:$4 sm:$0xff]  }
  0xc9   : > { %2560 = vmatprep.subr.bf16.mxu0 %v3671_v4 }
  0xca   : > { %2750 = vmatpush1.bf16.msra.mxu1 %v3666_v7  ;;  %v3716_v7 = vld [vmem:[#allocation5 + $0x2ec] ss:$16 sps:$4 sm:$0xff]  }
  0xcb   : > { %2772 = vmatprep.subr.bf16.mxu1 %v3674_v8 }
 0x13e   : > { %v723_v9 = vpop.f32.mrb[0].mxu0  ;;  %v776_v17 = vpop.f32.mrb[0].mxu1 }
 0x13f   : > { %v725_v10 = vpop.f32.mrb[1].mxu0  ;;  %v778_v18 = vpop.f32.mrb[1].mxu1 }
 0x140   : > { %v727_v11 = vpop.f32.mrb[2].mxu0  ;;  %v780_v24 = vpop.f32.mrb[2].mxu1 }
 0x141   : > { %v901_v12 = vpack.c.bf16 %v727_v11, %v723_v9  ;;  %v729_v13 = vpop.f32.mrb[3].mxu0  ;;  %v4207_v27 = vpack.c.bf16 %v780_v24, %v776_v17  ;;  %v782_v28 = vpop.f32.mrb[3].mxu1  ;;  %v3725_v24 = vld [vmem:[#allocation5 + $0x324] ss:$16 sps:$4 sm:$0xff]  }
 0x142   : > { %v902_v14 = vpack.c.bf16 %v729_v13, %v725_v10  ;;  %v904_v30 = vpack.c.bf16 %v782_v28, %v778_v18  ;;  %v3714_v13 = vld [vmem:[#allocation5 + $0x2e8] ss:$16 sps:$4 sm:$0xff]  }
 0x143   : > { %v917_v15 = vmul.bf16 1045249613, %v901_v12 }
 0x144   : > { %v918_v16 = vmul.bf16 1045249613, %v902_v14  ;;  %v920_v39 = vmul.bf16 1045249613, %v904_v30 }
 0x145   : > { %v933_v25 = vmax.bf16 %v917_v15, %v901_v12  ;;  %v3711_v12 = vld [vmem:[#allocation5 + $0x2e0] ss:$16 sps:$4 sm:$0xff]   ;;  %v3719_v15 = vld [vmem:[#allocation5 + $0x304] ss:$16 sps:$4 sm:$0xff]  }
 0x146   : > { %v934_v19 = vmax.bf16 %v918_v16, %v902_v14  ;;  %v733_v22 = vpop.f32.mrb[4].mxu0  ;;  %v936_v51 = vmax.bf16 %v920_v39, %v904_v30  ;;  %v3722_v16 = vld [vmem:[#allocation5 + $0x30c] ss:$16 sps:$4 sm:$0xff]  }
 0x147   : > { %v735_v1 = vpop.f32.mrb[5].mxu0  ;;  %v3740_v39 = vld [vmem:[#allocation5 + $0x36c] ss:$16 sps:$4 sm:$0xff]  }
 0x148   : > { %2539 = vmatprep.mubr.bf16.mxu0 %v934_v19  ;;  %2751 = vmatprep.mubr.bf16.mxu1 %v934_v19  ;;  %v737_v29 = vpop.f32.mrb[6].mxu0  ;;  %v786_v40 = vpop.f32.mrb[4].mxu1  ;;  %v3717_v19 = vld [vmem:[#allocation5 + $0x300] ss:$16 sps:$4 sm:$0xff]  }
 0x149   : > { %2540 = vmatmul.mubr.bf16.vlgmr.msra.gmra.mrb[16].mxu0 %v933_v25  ;;  %2752 = vmatmul.mubr.bf16.vlgmr.msra.gmra.mrb[16].mxu1 %v933_v25  ;;  %v909_v31 = vpack.c.bf16 %v737_v29, %v733_v22  ;;  %v739_v32 = vpop.f32.mrb[7].mxu0  ;;  %v788_v42 = vpop.f32.mrb[5].mxu1  ;;  %v3728_v25 = vld [vmem:[#allocation5 + $0x32c] ss:$16 sps:$4 sm:$0xff]  }
 0x14a   : > { %2561 = vmatpush1.bf16.msra.mxu0 %v3669_v20  ;;  %2773 = vmatpush1.bf16.msra.mxu1 %v3672_v21  ;;  %v910_v23 = vpack.c.bf16 %v739_v32, %v735_v1  ;;  %v790_v46 = vpop.f32.mrb[6].mxu1  ;;  %v3720_v20 = vld [vmem:[#allocation5 + $0x308] ss:$16 sps:$4 sm:$0xff]   ;;  %v3723_v32 = vld [vmem:[#allocation5 + $0x320] ss:$16 sps:$4 sm:$0xff]  }
 0x14b   : > { %2562 = vmatprep.subr.bf16.mxu0 %v3677_v26  ;;  %2774 = vmatprep.subr.bf16.mxu1 %v3680_v6  ;;  %v925_v37 = vmul.bf16 1045249613, %v909_v31  ;;  %v4209_v49 = vpack.c.bf16 %v790_v46, %v786_v40  ;;  %v792_v50 = vpop.f32.mrb[7].mxu1  ;;  %v3735_v40 = vld [vmem:[#allocation5 + $0x360] ss:$16 sps:$4 sm:$0xff]  }
 0x14c   : > { %v926_v38 = vmul.bf16 1045249613, %v910_v23  ;;  %v4211_v52 = vpack.c.bf16 %v792_v50, %v788_v42  ;;  %v3743_v42 = vld [vmem:[#allocation5 + $0x384] ss:$16 sps:$4 sm:$0xff]   ;;  %v3750_v50 = vld [vmem:[#allocation5 + $0x3a8] ss:$16 sps:$4 sm:$0xff]  }
 0x14d   : > { %v941_v41 = vmax.bf16 %v925_v37, %v909_v31  ;;  %v3732_v37 = vld [vmem:[#allocation5 + $0x348] ss:$16 sps:$4 sm:$0xff]   ;;  %v3749_v46 = vld [vmem:[#allocation5 + $0x3a4] ss:$16 sps:$4 sm:$0xff]  }
 0x14e   : > { %2563 = vmatpush1.bf16.msra.mxu0 %v3675_v33  ;;  %2775 = vmatpush1.bf16.msra.mxu1 %v3678_v34  ;;  %v942_v45 = vmax.bf16 %v926_v38, %v910_v23  ;;  %v3726_v33 = vld [vmem:[#allocation5 + $0x328] ss:$16 sps:$4 sm:$0xff]   ;;  %v3731_v23 = vld [vmem:[#allocation5 + $0x344] ss:$16 sps:$4 sm:$0xff]  }
 0x14f   : > { %2564 = vmatprep.subr.bf16.mxu0 %v3683_v35  ;;  %2776 = vmatprep.subr.bf16.mxu1 %v3686_v36  ;;  %v3734_v35 = vld [vmem:[#allocation5 + $0x34c] ss:$16 sps:$4 sm:$0xff]   ;;  %v3729_v36 = vld [vmem:[#allocation5 + $0x340] ss:$16 sps:$4 sm:$0xff]   ;;  %v3737_v38 = vld [vmem:[#allocation5 + $0x364] ss:$16 sps:$4 sm:$0xff]  }
 0x150   : > { %2549 = vmatprep.mubr.bf16.mxu0 %v942_v45  ;;  %2761 = vmatprep.mubr.bf16.mxu1 %v942_v45  ;;  %v3744_v45 = vld [vmem:[#allocation5 + $0x388] ss:$16 sps:$4 sm:$0xff]  }
 0x151   : > { %2550 = vmatmul.mubr.bf16.gmra.mrb[20].mxu0 %v941_v41  ;;  %2762 = vmatmul.mubr.bf16.gmra.mrb[20].mxu1 %v941_v41  ;;  %v3738_v41 = vld [vmem:[#allocation5 + $0x368] ss:$16 sps:$4 sm:$0xff]  }
 0x152   : > { %2565 = vmatpush1.bf16.msra.mxu0 %v3681_v43  ;;  %2777 = vmatpush1.bf16.msra.mxu1 %v3684_v44  ;;  %v3746_v43 = vld [vmem:[#allocation5 + $0x38c] ss:$16 sps:$4 sm:$0xff]   ;;  %v3741_v44 = vld [vmem:[#allocation5 + $0x380] ss:$16 sps:$4 sm:$0xff]  }
 0x153   : > { %2566 = vmatprep.subr.bf16.mxu0 %v3689_v47  ;;  %2778 = vmatprep.subr.bf16.mxu1 %v3692_v48  ;;  %v3752_v47 = vld [vmem:[#allocation5 + $0x3ac] ss:$16 sps:$4 sm:$0xff]   ;;  %v3747_v48 = vld [vmem:[#allocation5 + $0x3a0] ss:$16 sps:$4 sm:$0xff]  }
 0x154   : > { %2592 = vmatprep.mubr.bf16.mxu0 %v936_v51  ;;  %2804 = vmatprep.mubr.bf16.mxu1 %v936_v51  ;;  %v3755_v51 = vld [vmem:[#allocation5 + $0x3c4] ss:$16 sps:$4 sm:$0xff]  }
 0x156   : > { %2567 = vmatpush1.bf16.msra.mxu0 %v3687_v53  ;;  %2779 = vmatpush1.bf16.msra.mxu1 %v3690_v54  ;;  %v3758_v53 = vld [vmem:[#allocation5 + $0x3cc] ss:$16 sps:$4 sm:$0xff]   ;;  %v3753_v54 = vld [vmem:[#allocation5 + $0x3c0] ss:$16 sps:$4 sm:$0xff]  }
 0x157   : > { %2568 = vmatprep.subr.bf16.mxu0 %v3695_v55  ;;  %2780 = vmatprep.subr.bf16.mxu1 %v3698_v56  ;;  %v3756_v55 = vld [vmem:[#allocation5 + $0x3c8] ss:$16 sps:$4 sm:$0xff]  }
 0x15a   : > { %2569 = vmatpush1.bf16.msra.mxu0 %v3693_v57  ;;  %2781 = vmatpush1.bf16.msra.mxu1 %v3696_v58  ;;  %v3761_v57 = vld [vmem:[#allocation5 + $0x3e4] ss:$16 sps:$4 sm:$0xff]   ;;  %v3764_v58 = vld [vmem:[#allocation5 + $0x3ec] ss:$16 sps:$4 sm:$0xff]  }
 0x15b   : > { %2570 = vmatprep.subr.bf16.mxu0 %v3701_v59  ;;  %2782 = vmatprep.subr.bf16.mxu1 %v3704_v60  ;;  %v3759_v60 = vld [vmem:[#allocation5 + $0x3e0] ss:$16 sps:$4 sm:$0xff]  }
 0x15e   : > { %2571 = vmatpush1.bf16.msra.mxu0 %v3699_v61  ;;  %2783 = vmatpush1.bf16.msra.mxu1 %v3702_v62  ;;  %v829_v4 = vpop.f32.mrb[8].mxu0  ;;  %v3762_v61 = vld [vmem:[#allocation5 + $0x3e8] ss:$16 sps:$4 sm:$0xff]   ;;  %v3767_v62 = vld [vmem:[#allocation5 + $0x404] ss:$16 sps:$4 sm:$0xff]  }
 0x15f   : > { %2572 = vmatprep.subr.bf16.mxu0 %v3707_v63  ;;  %2784 = vmatprep.subr.bf16.mxu1 %v3710_v0  ;;  %v831_v8 = vpop.f32.mrb[9].mxu0  ;;  %v919_v0 = vmul.bf16 1045249613, %v4207_v27 }
 0x160   : > { %v833_v9 = vpop.f32.mrb[10].mxu0  ;;  %v882_v17 = vpop.f32.mrb[8].mxu1 }
 0x161   : > { %v4213_v10 = vpack.c.bf16 %v833_v9, %v829_v4  ;;  %v835_v11 = vpop.f32.mrb[11].mxu0  ;;  %v884_v18 = vpop.f32.mrb[9].mxu1  ;;  %v3768_v9 = vld [vmem:[#allocation5 + $0x408] ss:$16 sps:$4 sm:$0xff]  }
 0x162   : > { %2573 = vmatpush1.bf16.msra.mxu0 %v3705_v2  ;;  %2785 = vmatpush1.bf16.msra.mxu1 %v3708_v3  ;;  %v4215_v14 = vpack.c.bf16 %v835_v11, %v831_v8  ;;  %v886_v22 = vpop.f32.mrb[10].mxu1  ;;  %v3770_v2 = vld [vmem:[#allocation5 + $0x40c] ss:$16 sps:$4 sm:$0xff]   ;;  %v3765_v8 = vld [vmem:[#allocation5 + $0x400] ss:$16 sps:$4 sm:$0xff]   ;;  %v935_v11 = vmax.bf16 %v919_v0, %v4207_v27 }
 0x163   : > { %2574 = vmatprep.subr.bf16.mxu0 %v3713_v5  ;;  %2786 = vmatprep.subr.bf16.mxu1 %v3716_v7  ;;  %v4217_v6 = vpack.c.bf16 %v886_v22, %v882_v17  ;;  %v888_v1 = vpop.f32.mrb[11].mxu1  ;;  %v928_v5 = vmul.bf16 1045249613, %v4211_v52  ;;  %v3771_v17 = vld [vmem:[#allocation5 + $0x420] ss:$16 sps:$4 sm:$0xff]  }
 0x164   : > { %v4219_v29 = vpack.c.bf16 %v888_v1, %v884_v18  ;;  %v3774_v18 = vld [vmem:[#allocation5 + $0x428] ss:$16 sps:$4 sm:$0xff]   ;;  %v922_v27 = vmul.bf16 1045249613, %v4215_v14  ;;  %v3783_v1 = vld [vmem:[#allocation5 + $0x460] ss:$16 sps:$4 sm:$0xff]  }
 0x165   : > { %v3780_v22 = vld [vmem:[#allocation5 + $0x448] ss:$16 sps:$4 sm:$0xff]   ;;  %v3842_v0 = vld [vmem:[#allocation5 + $0x58c] ss:$16 sps:$4 sm:$0xff]  }
 0x166   : > { %2575 = vmatpush1.bf16.msra.mxu0 %v3711_v12  ;;  %2787 = vmatpush1.bf16.msra.mxu1 %v3714_v13  ;;  %v839_v21 = vpop.f32.mrb[12].mxu0  ;;  %v3773_v12 = vld [vmem:[#allocation5 + $0x424] ss:$16 sps:$4 sm:$0xff]   ;;  %v3776_v13 = vld [vmem:[#allocation5 + $0x42c] ss:$16 sps:$4 sm:$0xff]  }
 0x167   : > { %2576 = vmatprep.subr.bf16.mxu0 %v3719_v15  ;;  %2788 = vmatprep.subr.bf16.mxu1 %v3722_v16  ;;  %v841_v26 = vpop.f32.mrb[13].mxu0  ;;  %v944_v15 = vmax.bf16 %v928_v5, %v4211_v52  ;;  %v927_v16 = vmul.bf16 1045249613, %v4209_v49  ;;  %v3777_v52 = vld [vmem:[#allocation5 + $0x440] ss:$16 sps:$4 sm:$0xff]  }
 0x168   : > { %v843_v28 = vpop.f32.mrb[14].mxu0  ;;  %v892_v56 = vpop.f32.mrb[12].mxu1  ;;  %v3845_v5 = vld [vmem:[#allocation5 + $0x5a4] ss:$16 sps:$4 sm:$0xff]  }
 0x169   : > { %v4221_v30 = vpack.c.bf16 %v843_v28, %v839_v21  ;;  %v845_v31 = vpop.f32.mrb[15].mxu0  ;;  %v894_v59 = vpop.f32.mrb[13].mxu1  ;;  %v943_v21 = vmax.bf16 %v927_v16, %v4209_v49  ;;  %v3786_v28 = vld [vmem:[#allocation5 + $0x468] ss:$16 sps:$4 sm:$0xff]   ;;  %v3794_v49 = vld [vmem:[#allocation5 + $0x48c] ss:$16 sps:$4 sm:$0xff]  }
 0x16a   : > { %2577 = vmatpush1.bf16.msra.mxu0 %v3717_v19  ;;  %2789 = vmatpush1.bf16.msra.mxu1 %v3720_v20  ;;  %v4223_v34 = vpack.c.bf16 %v845_v31, %v841_v26  ;;  %v896_v63 = vpop.f32.mrb[14].mxu1  ;;  %v3779_v19 = vld [vmem:[#allocation5 + $0x444] ss:$16 sps:$4 sm:$0xff]   ;;  %v3782_v20 = vld [vmem:[#allocation5 + $0x44c] ss:$16 sps:$4 sm:$0xff]   ;;  %v938_v26 = vmax.bf16 %v922_v27, %v4215_v14 }
 0x16b   : > { %2578 = vmatprep.subr.bf16.mxu0 %v3725_v24  ;;  %2790 = vmatprep.subr.bf16.mxu1 %v3728_v25  ;;  %v4226_v3 = vpack.c.bf16 %v896_v63, %v892_v56  ;;  %v898_v4 = vpop.f32.mrb[15].mxu1  ;;  %v3785_v24 = vld [vmem:[#allocation5 + $0x464] ss:$16 sps:$4 sm:$0xff]   ;;  %v3788_v25 = vld [vmem:[#allocation5 + $0x46c] ss:$16 sps:$4 sm:$0xff]  }
 0x16c   : > { %v4229_v7 = vpack.c.bf16 %v898_v4, %v894_v59  ;;  %v3791_v31 = vld [vmem:[#allocation5 + $0x484] ss:$16 sps:$4 sm:$0xff]   ;;  %v3800_v14 = vld [vmem:[#allocation5 + $0x4ac] ss:$16 sps:$4 sm:$0xff]   ;;  %v3840_v4 = vld [vmem:[#allocation5 + $0x588] ss:$16 sps:$4 sm:$0xff]  }
 0x16d   : > { %v3830_v56 = vld [vmem:[#allocation5 + $0x54c] ss:$16 sps:$4 sm:$0xff]   ;;  %v3833_v59 = vld [vmem:[#allocation5 + $0x564] ss:$16 sps:$4 sm:$0xff]   ;;  %v3852_v16 = vld [vmem:[#allocation5 + $0x5c8] ss:$16 sps:$4 sm:$0xff]  }
 0x16e   : > { %2579 = vmatpush1.bf16.msra.mxu0 %v3723_v32  ;;  %2791 = vmatpush1.bf16.msra.mxu1 %v3726_v33  ;;  %v3789_v32 = vld [vmem:[#allocation5 + $0x480] ss:$16 sps:$4 sm:$0xff]   ;;  %v3792_v33 = vld [vmem:[#allocation5 + $0x488] ss:$16 sps:$4 sm:$0xff]   ;;  %v3839_v63 = vld [vmem:[#allocation5 + $0x584] ss:$16 sps:$4 sm:$0xff]  }
 0x16f   : > { %2580 = vmatprep.subr.bf16.mxu0 %v3731_v23  ;;  %2792 = vmatprep.subr.bf16.mxu1 %v3734_v35  ;;  %v3797_v23 = vld [vmem:[#allocation5 + $0x4a4] ss:$16 sps:$4 sm:$0xff]   ;;  %v3795_v35 = vld [vmem:[#allocation5 + $0x4a0] ss:$16 sps:$4 sm:$0xff]   ;;  %v921_v27 = vmul.bf16 1045249613, %v4213_v10 }
 0x172   : > { %2581 = vmatpush1.bf16.msra.mxu0 %v3729_v36  ;;  %2793 = vmatpush1.bf16.msra.mxu1 %v3732_v37  ;;  %v3798_v36 = vld [vmem:[#allocation5 + $0x4a8] ss:$16 sps:$4 sm:$0xff]   ;;  %v3803_v37 = vld [vmem:[#allocation5 + $0x4c4] ss:$16 sps:$4 sm:$0xff]  }
 0x173   : > { %2582 = vmatprep.subr.bf16.mxu0 %v3737_v38  ;;  %2794 = vmatprep.subr.bf16.mxu1 %v3740_v39  ;;  %v3806_v38 = vld [vmem:[#allocation5 + $0x4cc] ss:$16 sps:$4 sm:$0xff]   ;;  %v3801_v39 = vld [vmem:[#allocation5 + $0x4c0] ss:$16 sps:$4 sm:$0xff]  }
 0x176   : > { %2583 = vmatpush1.bf16.msra.mxu0 %v3735_v40  ;;  %2795 = vmatpush1.bf16.msra.mxu1 %v3738_v41  ;;  %v3804_v40 = vld [vmem:[#allocation5 + $0x4c8] ss:$16 sps:$4 sm:$0xff]   ;;  %v3809_v41 = vld [vmem:[#allocation5 + $0x4e4] ss:$16 sps:$4 sm:$0xff]  }
 0x177   : > { %2584 = vmatprep.subr.bf16.mxu0 %v3743_v42  ;;  %2796 = vmatprep.subr.bf16.mxu1 %v3746_v43  ;;  %v3812_v42 = vld [vmem:[#allocation5 + $0x4ec] ss:$16 sps:$4 sm:$0xff]   ;;  %v3807_v43 = vld [vmem:[#allocation5 + $0x4e0] ss:$16 sps:$4 sm:$0xff]  }
 0x17a   : > { %2585 = vmatpush1.bf16.msra.mxu0 %v3741_v44  ;;  %2797 = vmatpush1.bf16.msra.mxu1 %v3744_v45  ;;  %v3810_v44 = vld [vmem:[#allocation5 + $0x4e8] ss:$16 sps:$4 sm:$0xff]   ;;  %v3815_v45 = vld [vmem:[#allocation5 + $0x504] ss:$16 sps:$4 sm:$0xff]  }
 0x17b   : > { %2586 = vmatprep.subr.bf16.mxu0 %v3749_v46  ;;  %2798 = vmatprep.subr.bf16.mxu1 %v3752_v47  ;;  %v3818_v46 = vld [vmem:[#allocation5 + $0x50c] ss:$16 sps:$4 sm:$0xff]   ;;  %v3813_v47 = vld [vmem:[#allocation5 + $0x500] ss:$16 sps:$4 sm:$0xff]  }
 0x17e   : > { %2587 = vmatpush1.bf16.msra.mxu0 %v3747_v48  ;;  %2799 = vmatpush1.bf16.msra.mxu1 %v3750_v50  ;;  %v3816_v48 = vld [vmem:[#allocation5 + $0x508] ss:$16 sps:$4 sm:$0xff]   ;;  %v3821_v50 = vld [vmem:[#allocation5 + $0x524] ss:$16 sps:$4 sm:$0xff]  }
 0x17f   : > { %2588 = vmatprep.subr.bf16.mxu0 %v3755_v51  ;;  %2800 = vmatprep.subr.bf16.mxu1 %v3758_v53  ;;  %v3824_v51 = vld [vmem:[#allocation5 + $0x52c] ss:$16 sps:$4 sm:$0xff]   ;;  %v3819_v53 = vld [vmem:[#allocation5 + $0x520] ss:$16 sps:$4 sm:$0xff]  }
 0x182   : > { %2589 = vmatpush1.bf16.msra.mxu0 %v3753_v54  ;;  %2801 = vmatpush1.bf16.msra.mxu1 %v3756_v55  ;;  %v3822_v54 = vld [vmem:[#allocation5 + $0x528] ss:$16 sps:$4 sm:$0xff]   ;;  %v3827_v55 = vld [vmem:[#allocation5 + $0x544] ss:$16 sps:$4 sm:$0xff]  }
 0x183   : > { %2590 = vmatprep.subr.bf16.mxu0 %v3761_v57  ;;  %2802 = vmatprep.subr.bf16.mxu1 %v3764_v58  ;;  %v3825_v57 = vld [vmem:[#allocation5 + $0x540] ss:$16 sps:$4 sm:$0xff]   ;;  %v3828_v58 = vld [vmem:[#allocation5 + $0x548] ss:$16 sps:$4 sm:$0xff]  }
 0x186   : > { %2591 = vmatpush1.bf16.msra.mxu0 %v3759_v60  ;;  %2803 = vmatpush1.bf16.msra.mxu1 %v3762_v61  ;;  %v3836_v60 = vld [vmem:[#allocation5 + $0x56c] ss:$16 sps:$4 sm:$0xff]   ;;  %v3831_v61 = vld [vmem:[#allocation5 + $0x560] ss:$16 sps:$4 sm:$0xff]  }
 0x187   : > { %2613 = vmatprep.subr.bf16.mxu0 %v3767_v62  ;;  %2825 = vmatprep.subr.bf16.mxu1 %v3770_v2  ;;  %v3834_v62 = vld [vmem:[#allocation5 + $0x568] ss:$16 sps:$4 sm:$0xff]   ;;  %v3837_v2 = vld [vmem:[#allocation5 + $0x580] ss:$16 sps:$4 sm:$0xff]  }
 0x189   : > { %2593 = vmatmul.mubr.bf16.vlgmr.msra.gmra.mrb[16].mxu0 %v935_v11  ;;  %2805 = vmatmul.mubr.bf16.vlgmr.msra.gmra.mrb[16].mxu1 %v935_v11  ;;  %v3846_v11 = vld [vmem:[#allocation5 + $0x5a8] ss:$16 sps:$4 sm:$0xff]  }
 0x18a   : > { %2614 = vmatpush1.bf16.msra.mxu0 %v3765_v8  ;;  %2826 = vmatpush1.bf16.msra.mxu1 %v3768_v9  ;;  %v3848_v8 = vld [vmem:[#allocation5 + $0x5ac] ss:$16 sps:$4 sm:$0xff]   ;;  %v3843_v9 = vld [vmem:[#allocation5 + $0x5a0] ss:$16 sps:$4 sm:$0xff]  }
 0x18b   : > { %2615 = vmatprep.subr.bf16.mxu0 %v3773_v12  ;;  %2827 = vmatprep.subr.bf16.mxu1 %v3776_v13  ;;  %v3851_v12 = vld [vmem:[#allocation5 + $0x5c4] ss:$16 sps:$4 sm:$0xff]   ;;  %v3854_v13 = vld [vmem:[#allocation5 + $0x5cc] ss:$16 sps:$4 sm:$0xff]  }
 0x18c   : > { %2602 = vmatprep.mubr.bf16.mxu0 %v944_v15  ;;  %2814 = vmatprep.mubr.bf16.mxu1 %v944_v15  ;;  %v3849_v15 = vld [vmem:[#allocation5 + $0x5c0] ss:$16 sps:$4 sm:$0xff]  }
 0x18e   : > { %2616 = vmatpush1.bf16.msra.mxu0 %v3771_v17  ;;  %2828 = vmatpush1.bf16.msra.mxu1 %v3774_v18  ;;  %v3857_v17 = vld [vmem:[#allocation5 + $0x5e4] ss:$16 sps:$4 sm:$0xff]   ;;  %v3860_v18 = vld [vmem:[#allocation5 + $0x5ec] ss:$16 sps:$4 sm:$0xff]  }
 0x18f   : > { %2617 = vmatprep.subr.bf16.mxu0 %v3779_v19  ;;  %2829 = vmatprep.subr.bf16.mxu1 %v3782_v20  ;;  %v3855_v19 = vld [vmem:[#allocation5 + $0x5e0] ss:$16 sps:$4 sm:$0xff]   ;;  %v3858_v20 = vld [vmem:[#allocation5 + $0x5e8] ss:$16 sps:$4 sm:$0xff]  }
 0x191   : > { %2603 = vmatmul.mubr.bf16.gmra.mrb[20].mxu0 %v943_v21  ;;  %2815 = vmatmul.mubr.bf16.gmra.mrb[20].mxu1 %v943_v21  ;;  %v3863_v21 = vld [vmem:[#allocation5 + $0x604] ss:$16 sps:$4 sm:$0xff]  }
 0x192   : > { %2618 = vmatpush1.bf16.msra.mxu0 %v3777_v52  ;;  %2830 = vmatpush1.bf16.msra.mxu1 %v3780_v22  ;;  %v3866_v52 = vld [vmem:[#allocation5 + $0x60c] ss:$16 sps:$4 sm:$0xff]   ;;  %v930_v22 = vmul.bf16 1045249613, %v4223_v34 }
 0x193   : > { %2619 = vmatprep.subr.bf16.mxu0 %v3785_v24  ;;  %2831 = vmatprep.subr.bf16.mxu1 %v3788_v25  ;;  %v3861_v24 = vld [vmem:[#allocation5 + $0x600] ss:$16 sps:$4 sm:$0xff]   ;;  %v3864_v25 = vld [vmem:[#allocation5 + $0x608] ss:$16 sps:$4 sm:$0xff]  }
 0x194   : > { %2645 = vmatprep.mubr.bf16.mxu0 %v938_v26  ;;  %2857 = vmatprep.mubr.bf16.mxu1 %v938_v26  ;;  %v937_v26 = vmax.bf16 %v921_v27, %v4213_v10  ;;  %v924_v10 = vmul.bf16 1045249613, %v4219_v29  ;;  %v3944_v27 = vld [vmem:[#allocation5 + $0x7ac] ss:$16 sps:$4 sm:$0xff]  }
 0x196   : > { %2620 = vmatpush1.bf16.msra.mxu0 %v3783_v1  ;;  %2832 = vmatpush1.bf16.msra.mxu1 %v3786_v28  ;;  %v3869_v1 = vld [vmem:[#allocation5 + $0x624] ss:$16 sps:$4 sm:$0xff]   ;;  %v3872_v28 = vld [vmem:[#allocation5 + $0x62c] ss:$16 sps:$4 sm:$0xff]  }
 0x197   : > { %2621 = vmatprep.subr.bf16.mxu0 %v3791_v31  ;;  %2833 = vmatprep.subr.bf16.mxu1 %v3794_v49  ;;  %v946_v31 = vmax.bf16 %v930_v22, %v4223_v34  ;;  %v929_v49 = vmul.bf16 1045249613, %v4221_v30  ;;  %v3873_v34 = vld [vmem:[#allocation5 + $0x640] ss:$16 sps:$4 sm:$0xff]   ;;  %v3947_v22 = vld [vmem:[#allocation5 + $0x7c4] ss:$16 sps:$4 sm:$0xff]  }
 0x19a   : > { %2622 = vmatpush1.bf16.msra.mxu0 %v3789_v32  ;;  %2834 = vmatpush1.bf16.msra.mxu1 %v3792_v33  ;;  %v3867_v32 = vld [vmem:[#allocation5 + $0x620] ss:$16 sps:$4 sm:$0xff]   ;;  %v3870_v33 = vld [vmem:[#allocation5 + $0x628] ss:$16 sps:$4 sm:$0xff]  }
 0x19b   : > { %2623 = vmatprep.subr.bf16.mxu0 %v3797_v23  ;;  %2835 = vmatprep.subr.bf16.mxu1 %v3800_v14  ;;  %v3875_v23 = vld [vmem:[#allocation5 + $0x644] ss:$16 sps:$4 sm:$0xff]   ;;  %v3878_v14 = vld [vmem:[#allocation5 + $0x64c] ss:$16 sps:$4 sm:$0xff]  }
 0x19e   : > { %2624 = vmatpush1.bf16.msra.mxu0 %v3795_v35  ;;  %2836 = vmatpush1.bf16.msra.mxu1 %v3798_v36  ;;  %v945_v35 = vmax.bf16 %v929_v49, %v4221_v30  ;;  %v3876_v36 = vld [vmem:[#allocation5 + $0x648] ss:$16 sps:$4 sm:$0xff]   ;;  %v3890_v30 = vld [vmem:[#allocation5 + $0x68c] ss:$16 sps:$4 sm:$0xff]   ;;  %v3951_v49 = vld [vmem:[#allocation5 + $0x7e0] ss:$16 sps:$4 sm:$0xff]  }
 0x19f   : > { %2625 = vmatprep.subr.bf16.mxu0 %v3803_v37  ;;  %2837 = vmatprep.subr.bf16.mxu1 %v3806_v38  ;;  %v3881_v37 = vld [vmem:[#allocation5 + $0x664] ss:$16 sps:$4 sm:$0xff]   ;;  %v3884_v38 = vld [vmem:[#allocation5 + $0x66c] ss:$16 sps:$4 sm:$0xff]  }
 0x1a2   : > { %2626 = vmatpush1.bf16.msra.mxu0 %v3801_v39  ;;  %2838 = vmatpush1.bf16.msra.mxu1 %v3804_v40  ;;  %v940_v39 = vmax.bf16 %v924_v10, %v4219_v29  ;;  %v3879_v40 = vld [vmem:[#allocation5 + $0x660] ss:$16 sps:$4 sm:$0xff]   ;;  %v3896_v29 = vld [vmem:[#allocation5 + $0x6ac] ss:$16 sps:$4 sm:$0xff]   ;;  %v931_v10 = vmul.bf16 1045249613, %v4226_v3 }
 0x1a3   : > { %2627 = vmatprep.subr.bf16.mxu0 %v3809_v41  ;;  %2839 = vmatprep.subr.bf16.mxu1 %v3812_v42  ;;  %v3882_v41 = vld [vmem:[#allocation5 + $0x668] ss:$16 sps:$4 sm:$0xff]   ;;  %v3887_v42 = vld [vmem:[#allocation5 + $0x684] ss:$16 sps:$4 sm:$0xff]  }
 0x1a6   : > { %2628 = vmatpush1.bf16.msra.mxu0 %v3807_v43  ;;  %2840 = vmatpush1.bf16.msra.mxu1 %v3810_v44  ;;  %v3885_v43 = vld [vmem:[#allocation5 + $0x680] ss:$16 sps:$4 sm:$0xff]   ;;  %v3888_v44 = vld [vmem:[#allocation5 + $0x688] ss:$16 sps:$4 sm:$0xff]  }
 0x1a7   : > { %2629 = vmatprep.subr.bf16.mxu0 %v3815_v45  ;;  %2841 = vmatprep.subr.bf16.mxu1 %v3818_v46  ;;  %v3893_v45 = vld [vmem:[#allocation5 + $0x6a4] ss:$16 sps:$4 sm:$0xff]   ;;  %v3891_v46 = vld [vmem:[#allocation5 + $0x6a0] ss:$16 sps:$4 sm:$0xff]  }
 0x1aa   : > { %2630 = vmatpush1.bf16.msra.mxu0 %v3813_v47  ;;  %2842 = vmatpush1.bf16.msra.mxu1 %v3816_v48  ;;  %v3894_v47 = vld [vmem:[#allocation5 + $0x6a8] ss:$16 sps:$4 sm:$0xff]   ;;  %v3899_v48 = vld [vmem:[#allocation5 + $0x6c4] ss:$16 sps:$4 sm:$0xff]  }
 0x1ab   : > { %2631 = vmatprep.subr.bf16.mxu0 %v3821_v50  ;;  %2843 = vmatprep.subr.bf16.mxu1 %v3824_v51  ;;  %v3902_v50 = vld [vmem:[#allocation5 + $0x6cc] ss:$16 sps:$4 sm:$0xff]   ;;  %v3897_v51 = vld [vmem:[#allocation5 + $0x6c0] ss:$16 sps:$4 sm:$0xff]  }
 0x1ae   : > { %2632 = vmatpush1.bf16.msra.mxu0 %v3819_v53  ;;  %2844 = vmatpush1.bf16.msra.mxu1 %v3822_v54  ;;  %v3900_v53 = vld [vmem:[#allocation5 + $0x6c8] ss:$16 sps:$4 sm:$0xff]   ;;  %v3905_v54 = vld [vmem:[#allocation5 + $0x6e4] ss:$16 sps:$4 sm:$0xff]  }
 0x1af   : > { %2633 = vmatprep.subr.bf16.mxu0 %v3827_v55  ;;  %2845 = vmatprep.subr.bf16.mxu1 %v3830_v56  ;;  %v3908_v55 = vld [vmem:[#allocation5 + $0x6ec] ss:$16 sps:$4 sm:$0xff]   ;;  %v3903_v56 = vld [vmem:[#allocation5 + $0x6e0] ss:$16 sps:$4 sm:$0xff]  }
 0x1b2   : > { %2634 = vmatpush1.bf16.msra.mxu0 %v3825_v57  ;;  %2846 = vmatpush1.bf16.msra.mxu1 %v3828_v58  ;;  %v3906_v57 = vld [vmem:[#allocation5 + $0x6e8] ss:$16 sps:$4 sm:$0xff]   ;;  %v3911_v58 = vld [vmem:[#allocation5 + $0x704] ss:$16 sps:$4 sm:$0xff]  }
 0x1b3   : > { %2635 = vmatprep.subr.bf16.mxu0 %v3833_v59  ;;  %2847 = vmatprep.subr.bf16.mxu1 %v3836_v60  ;;  %v3914_v59 = vld [vmem:[#allocation5 + $0x70c] ss:$16 sps:$4 sm:$0xff]   ;;  %v3909_v60 = vld [vmem:[#allocation5 + $0x700] ss:$16 sps:$4 sm:$0xff]  }
 0x1b6   : > { %2636 = vmatpush1.bf16.msra.mxu0 %v3831_v61  ;;  %2848 = vmatpush1.bf16.msra.mxu1 %v3834_v62  ;;  %v3912_v61 = vld [vmem:[#allocation5 + $0x708] ss:$16 sps:$4 sm:$0xff]   ;;  %v3917_v62 = vld [vmem:[#allocation5 + $0x724] ss:$16 sps:$4 sm:$0xff]  }
 0x1b7   : > { %2637 = vmatprep.subr.bf16.mxu0 %v3839_v63  ;;  %2849 = vmatprep.subr.bf16.mxu1 %v3842_v0  ;;  %v3920_v63 = vld [vmem:[#allocation5 + $0x72c] ss:$16 sps:$4 sm:$0xff]   ;;  %v3915_v0 = vld [vmem:[#allocation5 + $0x720] ss:$16 sps:$4 sm:$0xff]  }
 0x1ba   : > { %2638 = vmatpush1.bf16.msra.mxu0 %v3837_v2  ;;  %2850 = vmatpush1.bf16.msra.mxu1 %v3840_v4  ;;  %v3918_v2 = vld [vmem:[#allocation5 + $0x728] ss:$16 sps:$4 sm:$0xff]   ;;  %v3923_v4 = vld [vmem:[#allocation5 + $0x744] ss:$16 sps:$4 sm:$0xff]  }
 0x1bb   : > { %2639 = vmatprep.subr.bf16.mxu0 %v3845_v5  ;;  %2851 = vmatprep.subr.bf16.mxu1 %v3848_v8  ;;  %v3926_v5 = vld [vmem:[#allocation5 + $0x74c] ss:$16 sps:$4 sm:$0xff]   ;;  %v3921_v8 = vld [vmem:[#allocation5 + $0x740] ss:$16 sps:$4 sm:$0xff]  }
 0x1be   : > { %2640 = vmatpush1.bf16.msra.mxu0 %v3843_v9  ;;  %2852 = vmatpush1.bf16.msra.mxu1 %v3846_v11  ;;  %v3924_v9 = vld [vmem:[#allocation5 + $0x748] ss:$16 sps:$4 sm:$0xff]   ;;  %v3929_v11 = vld [vmem:[#allocation5 + $0x764] ss:$16 sps:$4 sm:$0xff]  }
 0x1bf   : > { %2641 = vmatprep.subr.bf16.mxu0 %v3851_v12  ;;  %2853 = vmatprep.subr.bf16.mxu1 %v3854_v13  ;;  %v3932_v12 = vld [vmem:[#allocation5 + $0x76c] ss:$16 sps:$4 sm:$0xff]   ;;  %v3927_v13 = vld [vmem:[#allocation5 + $0x760] ss:$16 sps:$4 sm:$0xff]  }
 0x1c2   : > { %2642 = vmatpush1.bf16.msra.mxu0 %v3849_v15  ;;  %2854 = vmatpush1.bf16.msra.mxu1 %v3852_v16  ;;  %v3930_v15 = vld [vmem:[#allocation5 + $0x768] ss:$16 sps:$4 sm:$0xff]   ;;  %v3935_v16 = vld [vmem:[#allocation5 + $0x784] ss:$16 sps:$4 sm:$0xff]  }
 0x1c3   : > { %2643 = vmatprep.subr.bf16.mxu0 %v3857_v17  ;;  %2855 = vmatprep.subr.bf16.mxu1 %v3860_v18  ;;  %v3938_v17 = vld [vmem:[#allocation5 + $0x78c] ss:$16 sps:$4 sm:$0xff]   ;;  %v3933_v18 = vld [vmem:[#allocation5 + $0x780] ss:$16 sps:$4 sm:$0xff]  }
 0x1c6   : > { %2644 = vmatpush1.bf16.msra.mxu0 %v3855_v19  ;;  %2856 = vmatpush1.bf16.msra.mxu1 %v3858_v20  ;;  %v3936_v19 = vld [vmem:[#allocation5 + $0x788] ss:$16 sps:$4 sm:$0xff]   ;;  %v3941_v20 = vld [vmem:[#allocation5 + $0x7a4] ss:$16 sps:$4 sm:$0xff]  }
 0x1c7   : > { %2666 = vmatprep.subr.bf16.mxu0 %v3863_v21  ;;  %2878 = vmatprep.subr.bf16.mxu1 %v3866_v52  ;;  %v3939_v21 = vld [vmem:[#allocation5 + $0x7a0] ss:$16 sps:$4 sm:$0xff]   ;;  %v3942_v52 = vld [vmem:[#allocation5 + $0x7a8] ss:$16 sps:$4 sm:$0xff]  }
 0x1c9   : > { %2646 = vmatmul.mubr.bf16.vlgmr.msra.gmra.mrb[16].mxu0 %v937_v26  ;;  %2858 = vmatmul.mubr.bf16.vlgmr.msra.gmra.mrb[16].mxu1 %v937_v26  ;;  %v3948_v26 = vld [vmem:[#allocation5 + $0x7c8] ss:$16 sps:$4 sm:$0xff]  }
 0x1ca   : > { %2667 = vmatpush1.bf16.msra.mxu0 %v3861_v24  ;;  %2879 = vmatpush1.bf16.msra.mxu1 %v3864_v25  ;;  %v3950_v24 = vld [vmem:[#allocation5 + $0x7cc] ss:$16 sps:$4 sm:$0xff]   ;;  %v3945_v25 = vld [vmem:[#allocation5 + $0x7c0] ss:$16 sps:$4 sm:$0xff]  }
 0x1cb   : > { %2668 = vmatprep.subr.bf16.mxu0 %v3869_v1  ;;  %2880 = vmatprep.subr.bf16.mxu1 %v3872_v28  ;;  %v3953_v1 = vld [vmem:[#allocation5 + $0x7e4] ss:$16 sps:$4 sm:$0xff]   ;;  %v3956_v28 = vld [vmem:[#allocation5 + $0x7ec] ss:$16 sps:$4 sm:$0xff]  }
 0x1cc   : > { %2655 = vmatprep.mubr.bf16.mxu0 %v946_v31  ;;  %2867 = vmatprep.mubr.bf16.mxu1 %v946_v31  ;;  %v932_v31 = vmul.bf16 1045249613, %v4229_v7 }
 0x1ce   : > { %2669 = vmatpush1.bf16.msra.mxu0 %v3867_v32  ;;  %2881 = vmatpush1.bf16.msra.mxu1 %v3870_v33  ;;  %v3954_v32 = vld [vmem:[#allocation5 + $0x7e8] ss:$16 sps:$4 sm:$0xff]   ;;  %v923_v33 = vmul.bf16 1045249613, %v4217_v6 }
 0x1cf   : > { %2670 = vmatprep.subr.bf16.mxu0 %v3875_v23  ;;  %2882 = vmatprep.subr.bf16.mxu1 %v3878_v14  ;;  %v948_v23 = vmax.bf16 %v932_v31, %v4229_v7  ;;  %v1205_v7 = vld [vmem:[%s4293_s3] sm:$0xf] }
 0x1d0   : > { %v939_v14 = vmax.bf16 %v923_v33, %v4217_v6 }
 0x1d1   : > { %2656 = vmatmul.mubr.bf16.gmra.mrb[20].mxu0 %v945_v35  ;;  %2868 = vmatmul.mubr.bf16.gmra.mrb[20].mxu1 %v945_v35  ;;  %v947_v35 = vmax.bf16 %v931_v10, %v4226_v3 }
 0x1d2   : > { %2671 = vmatpush1.bf16.msra.mxu0 %v3873_v34  ;;  %2883 = vmatpush1.bf16.msra.mxu1 %v3876_v36  ;;  %v1207_v34 = vlaneseq }
 0x1d3   : > { %2672 = vmatprep.subr.bf16.mxu0 %v3881_v37  ;;  %2884 = vmatprep.subr.bf16.mxu1 %v3884_v38 }
 0x1d4   : > { %2698 = vmatprep.mubr.bf16.mxu0 %v940_v39  ;;  %2910 = vmatprep.mubr.bf16.mxu1 %v940_v39  ;;  %v1208_v36 = vshrl.u32 %v1207_v34, 7 }
 0x1d6   : > { %2673 = vmatpush1.bf16.msra.mxu0 %v3879_v40  ;;  %2885 = vmatpush1.bf16.msra.mxu1 %v3882_v41  ;;  %v1209_v37 = vsub.s32 0, %v1208_v36  ;;  %v1217_v38 = vsub.s32 2, %v1208_v36  ;;  %v1213_v39 = vsub.s32 1, %v1208_v36  ;;  %v1221_v6 = vsub.s32 3, %v1208_v36 }
 0x1d7   : > { %2674 = vmatprep.subr.bf16.mxu0 %v3887_v42  ;;  %2886 = vmatprep.subr.bf16.mxu1 %v3890_v30  ;;  %v2963_v42 = vld [vmem:[%s4294_s4] sm:$0xf] }
 0x1d8   : > { %v1210_v40 = vrot.slane %v1205_v7, %v1209_v37  ;;  %v1218_v41 = vrot.slane %v1205_v7, %v1217_v38  ;;  %v1214_v30 = vrot.slane %v1205_v7, %v1213_v39  ;;  %v1222_v3 = vrot.slane %v1205_v7, %v1221_v6 }
 0x1da   : > { %2675 = vmatpush1.bf16.msra.mxu0 %v3885_v43  ;;  %2887 = vmatpush1.bf16.msra.mxu1 %v3888_v44 }
 0x1db   : > { %2676 = vmatprep.subr.bf16.mxu0 %v3893_v45  ;;  %2888 = vmatprep.subr.bf16.mxu1 %v3896_v29  ;;  %v4257_v29 = vrot.slane %v2963_v42, %v1209_v37 }
 0x1de   : > { %2677 = vmatpush1.bf16.msra.mxu0 %v3891_v46  ;;  %2889 = vmatpush1.bf16.msra.mxu1 %v3894_v47 }
 0x1df   : > { %2678 = vmatprep.subr.bf16.mxu0 %v3899_v48  ;;  %2890 = vmatprep.subr.bf16.mxu1 %v3902_v50 }
 0x1e2   : > { %2679 = vmatpush1.bf16.msra.mxu0 %v3897_v51  ;;  %2891 = vmatpush1.bf16.msra.mxu1 %v3900_v53  ;;  %v4259_v51 = vrot.slane %v2963_v42, %v1213_v39 }
 0x1e3   : > { %2680 = vmatprep.subr.bf16.mxu0 %v3905_v54  ;;  %2892 = vmatprep.subr.bf16.mxu1 %v3908_v55 }
 0x1e6   : > { %2681 = vmatpush1.bf16.msra.mxu0 %v3903_v56  ;;  %2893 = vmatpush1.bf16.msra.mxu1 %v3906_v57  ;;  %v4263_v56 = vrot.slane %v2963_v42, %v1217_v38 }
 0x1e7   : > { %2682 = vmatprep.subr.bf16.mxu0 %v3911_v58  ;;  %2894 = vmatprep.subr.bf16.mxu1 %v3914_v59 }
 0x1ea   : > { %2683 = vmatpush1.bf16.msra.mxu0 %v3909_v60  ;;  %2895 = vmatpush1.bf16.msra.mxu1 %v3912_v61 }
 0x1eb   : > { %2684 = vmatprep.subr.bf16.mxu0 %v3917_v62  ;;  %2896 = vmatprep.subr.bf16.mxu1 %v3920_v63 }
 0x1ee   : > { %2685 = vmatpush1.bf16.msra.mxu0 %v3915_v0  ;;  %2897 = vmatpush1.bf16.msra.mxu1 %v3918_v2 }
 0x1ef   : > { %2686 = vmatprep.subr.bf16.mxu0 %v3923_v4  ;;  %2898 = vmatprep.subr.bf16.mxu1 %v3926_v5 }
 0x1f2   : > { %2687 = vmatpush1.bf16.msra.mxu0 %v3921_v8  ;;  %2899 = vmatpush1.bf16.msra.mxu1 %v3924_v9 }
 0x1f3   : > { %2688 = vmatprep.subr.bf16.mxu0 %v3929_v11  ;;  %2900 = vmatprep.subr.bf16.mxu1 %v3932_v12 }
 0x1f6   : > { %2689 = vmatpush1.bf16.msra.mxu0 %v3927_v13  ;;  %2901 = vmatpush1.bf16.msra.mxu1 %v3930_v15 }
 0x1f7   : > { %2690 = vmatprep.subr.bf16.mxu0 %v3935_v16  ;;  %2902 = vmatprep.subr.bf16.mxu1 %v3938_v17 }
 0x1fa   : > { %2691 = vmatpush1.bf16.msra.mxu0 %v3933_v18  ;;  %2903 = vmatpush1.bf16.msra.mxu1 %v3936_v19  ;;  %v2980_v18 = vrot.slane %v2963_v42, %v1221_v6 }
 0x1fb   : > { %2692 = vmatprep.subr.bf16.mxu0 %v3941_v20  ;;  %2904 = vmatprep.subr.bf16.mxu1 %v3944_v27 }
 0x1fe   : > { %2693 = vmatpush1.bf16.msra.mxu0 %v3939_v21  ;;  %2905 = vmatpush1.bf16.msra.mxu1 %v3942_v52 }
 0x1ff   : > { %2694 = vmatprep.subr.bf16.mxu0 %v3947_v22  ;;  %2906 = vmatprep.subr.bf16.mxu1 %v3950_v24 }
 0x202   : > { %2695 = vmatpush1.bf16.msra.mxu0 %v3945_v25  ;;  %2907 = vmatpush1.bf16.msra.mxu1 %v3948_v26 }
 0x203   : > { %2696 = vmatprep.subr.bf16.mxu0 %v3953_v1  ;;  %2908 = vmatprep.subr.bf16.mxu1 %v3956_v28 }
 0x206   : > { %2697 = vmatpush1.bf16.msra.mxu0 %v3951_v49  ;;  %2909 = vmatpush1.bf16.msra.mxu1 %v3954_v32 }
 0x209   : > { %2699 = vmatmul.mubr.bf16.vlgmr.msra.gmra.mrb[16].mxu0 %v939_v14  ;;  %2911 = vmatmul.mubr.bf16.vlgmr.msra.gmra.mrb[16].mxu1 %v939_v14 }
 0x20a   : > { %2708 = vmatprep.mubr.bf16.mxu0 %v948_v23  ;;  %2920 = vmatprep.mubr.bf16.mxu1 %v948_v23 }
 0x211   : > { %2709 = vmatmul.mubr.bf16.gmra.mrb[20].mxu0 %v947_v35  ;;  %2921 = vmatmul.mubr.bf16.gmra.mrb[20].mxu1 %v947_v35 }
 0x2dc   : > { %v2700_v43 = vpop.f32.mrb[16].mxu0  ;;  %v2912_v44 = vpop.f32.mrb[16].mxu1 }
 0x2dd   : > { %v3473_v45 = vadd.f32 %v2700_v43, %v1210_v40  ;;  %v3481_v46 = vadd.f32 %v2912_v44, %v1218_v41  ;;  %v2702_v47 = vpop.f32.mrb[17].mxu0  ;;  %v2914_v48 = vpop.f32.mrb[17].mxu1 }
 0x2de   : > { %v3474_v50 = vadd.f32 %v2702_v47, %v1214_v30  ;;  %v4261_v53 = vadd.f32 %v2914_v48, %v1222_v3  ;;  %v2704_v54 = vpop.f32.mrb[18].mxu0  ;;  %v2916_v55 = vpop.f32.mrb[18].mxu1 }
 0x2df   : > { %v2931_v57 = vmul.f32 0.2, %v3473_v45  ;;  %v2933_v58 = vmul.f32 0.2, %v3481_v46  ;;  %v3475_v59 = vadd.f32 %v2704_v54, %v1210_v40  ;;  %v3483_v60 = vadd.f32 %v2916_v55, %v1218_v41  ;;  %v2706_v61 = vpop.f32.mrb[19].mxu0  ;;  %v2918_v62 = vpop.f32.mrb[19].mxu1 }
 0x2e0   : > { %v2932_v63 = vmul.f32 0.2, %v3474_v50  ;;  %v2934_v0 = vmul.f32 0.2, %v4261_v53  ;;  %v3476_v2 = vadd.f32 %v2706_v61, %v1214_v30  ;;  %v4266_v4 = vadd.f32 %v2918_v62, %v1222_v3 }
 0x2e1   : > { %v2947_v5 = vmax.f32 %v3473_v45, %v2931_v57  ;;  %v2949_v8 = vmax.f32 %v3481_v46, %v2933_v58  ;;  %v2935_v9 = vmul.f32 0.2, %v3475_v59  ;;  %v2937_v11 = vmul.f32 0.2, %v3483_v60 }
 0x2e2   : > { %v2948_v12 = vmax.f32 %v3474_v50, %v2932_v63  ;;  %v2936_v13 = vmul.f32 0.2, %v3476_v2  ;;  %v2938_v15 = vmul.f32 0.2, %v4266_v4  ;;  %v2950_v20 = vmax.f32 %v4261_v53, %v2934_v0 }
 0x2e3   : > { %v2985_v16 = vmul.f32 %v4257_v29, %v2947_v5  ;;  %v2951_v17 = vmax.f32 %v3475_v59, %v2935_v9  ;;  %v2953_v27 = vmax.f32 %v3483_v60, %v2937_v11  ;;  %v2987_v22 = vmul.f32 %v4263_v56, %v2949_v8 }
 0x2e4   : > { %v2986_v19 = vmul.f32 %v4259_v51, %v2948_v12  ;;  %v2710_v21 = vpop.f32.mrb[20].mxu0  ;;  %v2922_v52 = vpop.f32.mrb[20].mxu1  ;;  %v2952_v24 = vmax.f32 %v3476_v2, %v2936_v13  ;;  %v2954_v25 = vmax.f32 %v4266_v4, %v2938_v15 }
 0x2e5   : > { %v3477_v26 = vadd.f32 %v2710_v21, %v1210_v40  ;;  %v3485_v1 = vadd.f32 %v2922_v52, %v1218_v41  ;;  %v2712_v28 = vpop.f32.mrb[21].mxu0  ;;  %v2924_v31 = vpop.f32.mrb[21].mxu1  ;;  %v2989_v49 = vmul.f32 %v4257_v29, %v2951_v17 }
 0x2e6   : > { %v3478_v32 = vadd.f32 %v2712_v28, %v1214_v30  ;;  %v3486_v33 = vadd.f32 %v2924_v31, %v1222_v3  ;;  %v2714_v23 = vpop.f32.mrb[22].mxu0  ;;  %v2926_v14 = vpop.f32.mrb[22].mxu1  ;;  %v3001_v10 = vadd.f32 %v2986_v19, %v2985_v16  ;;  %v2990_v44 = vmul.f32 %v4259_v51, %v2952_v24 }
 0x2e7   : > { %v2939_v35 = vmul.f32 0.2, %v3477_v26  ;;  %v2941_v34 = vmul.f32 0.2, %v3485_v1  ;;  %v3479_v36 = vadd.f32 %v2714_v23, %v1210_v40  ;;  %v3487_v37 = vadd.f32 %v2926_v14, %v1218_v41  ;;  %v2716_v38 = vpop.f32.mrb[23].mxu0  ;;  %v2928_v7 = vpop.f32.mrb[23].mxu1 }
 0x2e8   : > { %v2940_v39 = vmul.f32 0.2, %v3478_v32  ;;  %v2942_v6 = vmul.f32 0.2, %v3486_v33  ;;  %v3480_v42 = vadd.f32 %v2716_v38, %v1214_v30  ;;  %v3488_v43 = vadd.f32 %v2928_v7, %v1222_v3 }
 0x2e9   : > { %v2955_v45 = vmax.f32 %v3477_v26, %v2939_v35  ;;  %v2943_v46 = vmul.f32 0.2, %v3479_v36  ;;  %v2945_v47 = vmul.f32 0.2, %v3487_v37  ;;  %v2957_v48 = vmax.f32 %v3485_v1, %v2941_v34 }
 0x2ea   : > { %v2956_v50 = vmax.f32 %v3478_v32, %v2940_v39  ;;  %v2944_v53 = vmul.f32 0.2, %v3480_v42  ;;  %v2946_v54 = vmul.f32 0.2, %v3488_v43  ;;  %v2988_v40 = vmul.f32 %v2980_v18, %v2950_v20 }
 0x2eb   : > { %v2993_v55 = vmul.f32 %v4257_v29, %v2955_v45  ;;  %v2959_v57 = vmax.f32 %v3479_v36, %v2943_v46  ;;  %v3002_v41 = vadd.f32 %v3001_v10, %v2987_v22  ;;  %v2958_v59 = vmax.f32 %v3486_v33, %v2942_v6 }
 0x2ec   : > { %v2994_v58 = vmul.f32 %v4259_v51, %v2956_v50  ;;  %v2961_v60 = vmax.f32 %v3487_v37, %v2945_v47  ;;  %v2960_v30 = vmax.f32 %v3480_v42, %v2944_v53  ;;  %v2991_v3 = vmul.f32 %v4263_v56, %v2953_v27 }
 0x2ed   : > { %v2997_v61 = vmul.f32 %v4257_v29, %v2959_v57  ;;  %v3003_v62 = vadd.f32 %v3002_v41, %v2988_v40  ;;  %v3006_v63 = vadd.f32 %v2990_v44, %v2989_v49  ;;  %v2962_v2 = vmax.f32 %v3488_v43, %v2946_v54 }
 0x2ee   : > { %v2998_v0 = vmul.f32 %v4259_v51, %v2960_v30  ;;  %v2995_v4 = vmul.f32 %v4263_v56, %v2957_v48  ;;  %v3011_v5 = vadd.f32 %v2994_v58, %v2993_v55  ;;  %v2992_v8 = vmul.f32 %v2980_v18, %v2954_v25  ;;  %v3470_v51 = vld [vmem:[#allocation2] ss:$0 sm:$0xff] }
 0x2ef   : > { %3004 = vadd.xlane.f32.xlu0 %v3003_v62  ;;  %v3007_v9 = vadd.f32 %v3006_v63, %v2991_v3  ;;  %v2999_v11 = vmul.f32 %v4263_v56, %v2961_v60  ;;  %v2996_v12 = vmul.f32 %v2980_v18, %v2958_v59  ;;  %v3000_v19 = vmul.f32 %v2980_v18, %v2962_v2 }
 0x2f0   : > { %v3012_v13 = vadd.f32 %v3011_v5, %v2995_v4  ;;  %v3016_v15 = vadd.f32 %v2998_v0, %v2997_v61 }
 0x2f1   : > { %v3008_v16 = vadd.f32 %v3007_v9, %v2992_v8 }
 0x2f2   : > { %v3013_v17 = vadd.f32 %v3012_v13, %v2996_v12  ;;  %v3017_v29 = vadd.f32 %v3016_v15, %v2999_v11 }
 0x2f3   : > { %3009 = vadd.xlane.f32.xlu0 %v3008_v16 }
 0x2f4   : > { %3014 = vadd.xlane.f32.xlu1 %v3013_v17  ;;  %v3018_v20 = vadd.f32 %v3017_v29, %v3000_v19 }
 0x2f8   : > { %3019 = vadd.xlane.f32.xlu1 %v3018_v20 }
 0x37c   : > { %v3005_v27 = vpop.xlane.xlu0 %3004 }
 0x37d   : > { %v3028_v21 = vadd.f32 %v3470_v51, %v3005_v27 }
 0x37f   : > { %v3032_v52 = vsub.f32 0.0, %v3028_v21 }
 0x380   : > { %v3010_v22 = vpop.xlane.xlu0 %3009 }
 0x381   : > { %v3036_v24 = vmul.f32 1.442695, %v3032_v52  ;;  %v3029_v25 = vadd.f32 %v3470_v51, %v3010_v22  ;;  %v3015_v26 = vpop.xlane.xlu1 %3014 }
 0x382   : > { %v3030_v56 = vadd.f32 %v3470_v51, %v3015_v26 }
 0x383   : > { %3957 = vpow2.f32 %v3036_v24  ;;  %v3033_v1 = vsub.f32 0.0, %v3029_v25 }
 0x384   : > { %v3034_v28 = vsub.f32 0.0, %v3030_v56 }
 0x385   : > { %v3038_v31 = vmul.f32 1.442695, %v3033_v1  ;;  %v3020_v49 = vpop.xlane.xlu1 %3019 }
 0x386   : > { %v3040_v18 = vmul.f32 1.442695, %v3034_v28  ;;  %v3031_v32 = vadd.f32 %v3470_v51, %v3020_v49 }
 0x387   : > { %3959 = vpow2.f32 %v3038_v31 }
 0x388   : > { %3961 = vpow2.f32 %v3040_v18  ;;  %v3035_v33 = vsub.f32 0.0, %v3031_v32 }
 0x38a   : > { %v3042_v23 = vmul.f32 1.442695, %v3035_v33 }
 0x38c   : > { %3963 = vpow2.f32 %v3042_v23 }
 0x38d   : > { %v3958_v14 = vpop.eup %3957 }
 0x38e   : > { %v3044_v10 = vadd.f32 1.0, %v3958_v14 }
 0x390   : > { %3965 = vrcp.f32 %v3044_v10 }
 0x391   : > { %v3960_v35 = vpop.eup %3959 }
 0x392   : > { %v3962_v34 = vpop.eup %3961  ;;  %v3045_v36 = vadd.f32 1.0, %v3960_v35 }
 0x393   : > { %v3046_v37 = vadd.f32 1.0, %v3962_v34 }
 0x394   : > { %3967 = vrcp.f32 %v3045_v36 }
 0x395   : > { %3969 = vrcp.f32 %v3046_v37 }
 0x396   : > { %v3964_v38 = vpop.eup %3963 }
 0x397   : > { %v3047_v7 = vadd.f32 1.0, %v3964_v38 }
 0x399   : > { %3971 = vrcp.f32 %v3047_v7 }
 0x39a   : > { %v3966_v39 = vpop.eup %3965 }
 0x39b   : > { %3053 = vst.msk [vmem:[%s285_s19] sm:$0xff] %vm3052_vm0, %v3966_v39 }
 0x39e   : > { %v3968_v6 = vpop.eup %3967 }
 0x39f   : > { %v3970_v42 = vpop.eup %3969  ;;  %3054 = vst.msk [vmem:[%s285_s19 + $0x8] sm:$0xff] %vm3052_vm0, %v3968_v6 }
 0x3a0   : > { %3055 = vst.msk [vmem:[%s285_s19 + $0x10] sm:$0xff] %vm3052_vm0, %v3970_v42 }
 0x3a3   : > { %v3972_v43 = vpop.eup %3971 }
 0x3a4   : > { %3056 = vst.msk [vmem:[%s285_s19 + $0x18] sm:$0xff] %vm3052_vm0, %v3972_v43 }
 0x3a5 PF: > { %s20_s23 = sadd.s32 1, %s4043_s23  }
 0x3a6   : > { %p17_p2 = scmp.ge.s32.totalorder %s20_s23, 4  }
 0x3a8   :  { %19 = sbr.rel (!%p17_p2) target bundleno = 5 (0x5), region = 83 }
 0x3af   :  { %3079 = vsyncpa [#allocation4], 1 }
 0x3b0   :  { %3081 = vsyncpa [#allocation4 + $0x1], 1 }
 0x3b1   :  { %3082 = vsyncpa [#allocation6], 1 }

</bundles_post_ra>
